<compile_context>
chip_gen: v7x
topology: tpu7x:2x2x1
jax: 0.10.0
libtpu: 0.0.40
codegen_flags: <defaults>
</compile_context>

<pallas_src>
import jax
import jax.numpy as jnp
from jax.experimental import pallas as pl
from jax.experimental.pallas import tpu as pltpu

# ---- model hyper-parameters (args.din, args.dfc, args.nhead, args.nlayers) ----
MEL_DIM = 40
DIN     = 32      # args.din
DFC     = 64      # args.dim_feedforward
NHEAD   = 2       # args.nhead
DH      = DIN // NHEAD
NLAYERS = 2       # args.nlayers
N_SPKS  = 16      # n_spks (kept small for the demo)
SEQ     = 8
BATCH   = 2
LN_EPS  = 1e-5

SLAB_COLS = 128   # lane width of the packed parameter slab


# ---------------------------------------------------------------------------
# Packed-parameter slab layout (static, computed once at import time).
# Every entry is stored pre-transposed as (in_dim, out_dim), starts on an
# 8-sublane boundary and is zero-padded to 128 lanes.
# ---------------------------------------------------------------------------
def _make_layout():
    entries = [("w_pre", (MEL_DIM, DIN)), ("b_pre", (1, DIN))]
    for l in range(NLAYERS):
        entries += [
            (f"w_in{l}",  (DIN, 3 * DIN)), (f"b_in{l}",  (1, 3 * DIN)),
            (f"w_out{l}", (DIN, DIN)),     (f"b_out{l}", (1, DIN)),
            (f"ln1_w{l}", (1, DIN)),       (f"ln1_b{l}", (1, DIN)),
            (f"w1{l}",    (DIN, DFC)),     (f"b1{l}",    (1, DFC)),
            (f"w2{l}",    (DFC, DIN)),     (f"b2{l}",    (1, DIN)),
            (f"ln2_w{l}", (1, DIN)),       (f"ln2_b{l}", (1, DIN)),
        ]
    entries += [("w_attn", (DIN, 1)), ("b_attn", (1, 1)),
                ("w_pred", (DIN, N_SPKS)), ("b_pred", (1, N_SPKS))]
    layout, off = {}, 0
    for name, (r, c) in entries:
        layout[name] = (off, r, c)
        off += -(-r // 8) * 8          # keep every entry sublane-aligned
    return layout, off


LAYOUT, SLAB_ROWS = _make_layout()     # SLAB_ROWS is a multiple of 8


def pack_params(p):
    """Host-side: transpose to (in, out), fold q-scale, pack into one slab."""
    scale = 1.0 / (DH ** 0.5)
    slab = jnp.zeros((SLAB_ROWS, SLAB_COLS), jnp.float32)

    def put(slab, name, mat):
        off, r, c = LAYOUT[name]
        assert mat.shape == (r, c), (name, mat.shape, (r, c))
        return slab.at[off:off + r, :c].set(mat.astype(jnp.float32))

    # fold 1/sqrt(dh) into the q columns of the in-projection (weights + bias)
    w_in_t = jnp.transpose(p["w_in"], (0, 2, 1))           # (NL, DIN, 3*DIN)
    w_in_t = w_in_t.at[:, :, :DIN].multiply(scale)
    b_in = p["b_in"].at[:, :, :DIN].multiply(scale)        # (NL, 1, 3*DIN)

    slab = put(slab, "w_pre", p["w_pre"].T)
    slab = put(slab, "b_pre", p["b_pre"])
    for l in range(NLAYERS):
        slab = put(slab, f"w_in{l}",  w_in_t[l])
        slab = put(slab, f"b_in{l}",  b_in[l])
        slab = put(slab, f"w_out{l}", p["w_out"][l].T)
        slab = put(slab, f"b_out{l}", p["b_out"][l])
        slab = put(slab, f"ln1_w{l}", p["ln1_w"][l])
        slab = put(slab, f"ln1_b{l}", p["ln1_b"][l])
        slab = put(slab, f"w1{l}",    p["w1"][l].T)
        slab = put(slab, f"b1{l}",    p["b1"][l])
        slab = put(slab, f"w2{l}",    p["w2"][l].T)
        slab = put(slab, f"b2{l}",    p["b2"][l])
        slab = put(slab, f"ln2_w{l}", p["ln2_w"][l])
        slab = put(slab, f"ln2_b{l}", p["ln2_b"][l])
    slab = put(slab, "w_attn", p["w_attn"].T)
    slab = put(slab, "b_attn", p["b_attn"])
    slab = put(slab, "w_pred", p["w_pred"].T)
    slab = put(slab, "b_pred", p["b_pred"])
    return slab


# ---------------------------------------------------------------------------
# Kernel helpers
# ---------------------------------------------------------------------------
def _layer_norm(x, gamma, beta):
    mean = jnp.mean(x, axis=-1, keepdims=True)
    var = jnp.mean((x - mean) ** 2, axis=-1, keepdims=True)
    return (x - mean) * jax.lax.rsqrt(var + LN_EPS) * gamma + beta


def _softmax_last(x):
    m = jnp.max(x, axis=-1, keepdims=True)
    e = jnp.exp(x - m)
    return e / jnp.sum(e, axis=-1, keepdims=True)


def _make_kernel(B, L):
    BL = B * L

    def kernel(x_ref, slab_ref, out_ref):
        def g(name):
            off, r, c = LAYOUT[name]
            return slab_ref[pl.ds(off, r), pl.ds(0, c)]

        # prenet: Linear(40 -> din)   (weights already stored (in, out); no .T)
        x = jnp.dot(x_ref[...], g("w_pre"),
                    preferred_element_type=jnp.float32) + g("b_pre")       # (BL, DIN)

        # TransformerEncoder (post-norm, ReLU FFN, dropout = identity)
        for l in range(NLAYERS):
            qkv = jnp.dot(x, g(f"w_in{l}"),
                          preferred_element_type=jnp.float32) + g(f"b_in{l}")  # (BL, 3*DIN)
            # q already carries the 1/sqrt(dh) scale (folded at pack time)
            q = qkv[:, 0:DIN].reshape(B, L, DIN)
            k = qkv[:, DIN:2 * DIN].reshape(B, L, DIN)
            v = qkv[:, 2 * DIN:3 * DIN].reshape(B, L, DIN)

            heads = []
            for h in range(NHEAD):
                sl = slice(h * DH, (h + 1) * DH)
                s = jnp.einsum("bqd,bkd->bqk", q[:, :, sl], k[:, :, sl],
                               preferred_element_type=jnp.float32)         # (B, L, L)
                p = _softmax_last(s)
                heads.append(jnp.einsum("bqk,bkd->bqd", p, v[:, :, sl],
                                        preferred_element_type=jnp.float32))
            attn = jnp.concatenate(heads, axis=-1).reshape(BL, DIN)
            attn = jnp.dot(attn, g(f"w_out{l}"),
                           preferred_element_type=jnp.float32) + g(f"b_out{l}")
            x = _layer_norm(x + attn, g(f"ln1_w{l}"), g(f"ln1_b{l}"))

            h1 = jnp.maximum(
                jnp.dot(x, g(f"w1{l}"),
                        preferred_element_type=jnp.float32) + g(f"b1{l}"), 0.0)
            ff = jnp.dot(h1, g(f"w2{l}"),
                         preferred_element_type=jnp.float32) + g(f"b2{l}")
            x = _layer_norm(x + ff, g(f"ln2_w{l}"), g(f"ln2_b{l}"))

        # attention pooling: Linear(d -> 1) + softmax over the length axis
        scores = jnp.dot(x, g("w_attn"),
                         preferred_element_type=jnp.float32) + g("b_attn")  # (BL, 1)
        s3 = scores.reshape(B, L, 1)
        m = jnp.max(s3, axis=1, keepdims=True)
        e = jnp.exp(s3 - m)
        aw = e / jnp.sum(e, axis=1, keepdims=True)                          # (B, L, 1)
        pooled = jnp.sum(aw * x.reshape(B, L, DIN), axis=1)                 # (B, DIN)

        # prediction head: use the zero-padded 128-lane slab rows so the output
        # store is lane-dense; logits[:, N_SPKS:] are exact zeros.
        off_w, rw, _ = LAYOUT["w_pred"]
        off_b, _, _ = LAYOUT["b_pred"]
        w_pred = slab_ref[pl.ds(off_w, rw), :]                              # (DIN, 128)
        b_pred = slab_ref[pl.ds(off_b, 1), :]                               # (1, 128)
        out_ref[...] = jnp.dot(pooled, w_pred,
                               preferred_element_type=jnp.float32) + b_pred

    return kernel


# ---------------------------------------------------------------------------
# Wrapper
# ---------------------------------------------------------------------------
def sample_classifier_attn_pool(mels, params):
    B, L, _ = mels.shape
    slab = pack_params(params)                 # (SLAB_ROWS, 128) single weight DMA
    x = mels.reshape(B * L, MEL_DIM)           # flatten batch*length into the rows

    logits_pad = pl.pallas_call(
        _make_kernel(B, L),
        out_shape=jax.ShapeDtypeStruct((B, SLAB_COLS), jnp.float32),
        grid=(1,),                             # whole problem in one grid step
        in_specs=[
            pl.BlockSpec((B * L, MEL_DIM), lambda i: (0, 0)),
            pl.BlockSpec((SLAB_ROWS, SLAB_COLS), lambda i: (0, 0)),
        ],
        out_specs=pl.BlockSpec((B, SLAB_COLS), lambda i: (0, 0)),
        compiler_params=pltpu.CompilerParams(dimension_semantics=("arbitrary",)),
    )(x, slab)
    return logits_pad[:, :N_SPKS]


# ---------------------------------------------------------------------------
# Parameter init (PyTorch-style (out, in) layout) + pure-JAX reference
# ---------------------------------------------------------------------------
def init_params(key):
    ks = jax.random.split(key, 16)

    def n(k, shape, scale=0.05):
        return jax.random.normal(k, shape, jnp.float32) * scale

    return {
        "w_pre":  n(ks[0],  (DIN, MEL_DIM)),
        "b_pre":  n(ks[1],  (1, DIN)),
        "w_in":   n(ks[2],  (NLAYERS, 3 * DIN, DIN)),
        "b_in":   n(ks[3],  (NLAYERS, 1, 3 * DIN)),
        "w_out":  n(ks[4],  (NLAYERS, DIN, DIN)),
        "b_out":  n(ks[5],  (NLAYERS, 1, DIN)),
        "ln1_w":  jnp.ones((NLAYERS, 1, DIN), jnp.float32),
        "ln1_b":  jnp.zeros((NLAYERS, 1, DIN), jnp.float32),
        "w1":     n(ks[6],  (NLAYERS, DFC, DIN)),
        "b1":     n(ks[7],  (NLAYERS, 1, DFC)),
        "w2":     n(ks[8],  (NLAYERS, DIN, DFC)),
        "b2":     n(ks[9],  (NLAYERS, 1, DIN)),
        "ln2_w":  jnp.ones((NLAYERS, 1, DIN), jnp.float32),
        "ln2_b":  jnp.zeros((NLAYERS, 1, DIN), jnp.float32),
        "w_attn": n(ks[10], (1, DIN)),
        "b_attn": n(ks[11], (1, 1)),
        "w_pred": n(ks[12], (N_SPKS, DIN)),
        "b_pred": n(ks[13], (1, N_SPKS)),
    }


def reference_forward(mels, p):
    """Pure-JAX mirror of the PyTorch forward (eval mode)."""
    x = jnp.einsum("blm,dm->bld", mels, p["w_pre"]) + p["b_pre"][0]
    for l in range(NLAYERS):
        qkv = jnp.einsum("bld,gd->blg", x, p["w_in"][l]) + p["b_in"][l, 0]
        q, k, v = jnp.split(qkv, 3, axis=-1)

        def heads(t):
            return t.reshape(t.shape[0], t.shape[1], NHEAD, DH).transpose(0, 2, 1, 3)

        qh, kh, vh = heads(q), heads(k), heads(v)
        s = jnp.einsum("bhqd,bhkd->bhqk", qh, kh) / (DH ** 0.5)
        o = jnp.einsum("bhqk,bhkd->bhqd", jax.nn.softmax(s, axis=-1), vh)
        o = o.transpose(0, 2, 1, 3).reshape(x.shape)
        o = jnp.einsum("bld,gd->blg", o, p["w_out"][l]) + p["b_out"][l, 0]
        x = _layer_norm(x + o, p["ln1_w"][l, 0], p["ln1_b"][l, 0])
        h1 = jax.nn.relu(jnp.einsum("bld,fd->blf", x, p["w1"][l]) + p["b1"][l, 0])
        ff = jnp.einsum("blf,df->bld", h1, p["w2"][l]) + p["b2"][l, 0]
        x = _layer_norm(x + ff, p["ln2_w"][l, 0], p["ln2_b"][l, 0])
    scores = jnp.einsum("bld,od->blo", x, p["w_attn"]) + p["b_attn"][0]
    w = jax.nn.softmax(scores, axis=1)
    pooled = jnp.einsum("blo,bld->bd", w, x)
    return jnp.einsum("bd,sd->bs", pooled, p["w_pred"]) + p["b_pred"][0]


if __name__ == "__main__":
    key = jax.random.PRNGKey(0)
    k_params, k_in = jax.random.split(key)
    params = init_params(k_params)
    mels = jax.random.normal(k_in, (BATCH, SEQ, MEL_DIM), jnp.float32)

    out = sample_classifier_attn_pool(mels, params)
    out = jax.block_until_ready(out)

    ref = reference_forward(mels, params)
    assert out.shape == (BATCH, N_SPKS)
    assert jnp.allclose(out, ref, atol=2e-4, rtol=2e-4), (
        f"max abs err = {jnp.max(jnp.abs(out - ref))}")
    print("KERNEL_OK")
</pallas_src>

<mosaic_0001>
module attributes {stable_mosaic.version = 11 : i64} {
  func.func @kernel(%arg0: i32, %arg1: memref<16x40xf32, #tpu.memory_space<vmem>>, %arg2: memref<576x128xf32, #tpu.memory_space<vmem>>, %arg3: memref<2x128xf32, #tpu.memory_space<vmem>>) attributes {dimension_semantics = [#tpu.dimension_semantics<arbitrary>], iteration_bounds = array<i64: 1>, scalar_prefetch = 0 : i64, scratch_operands = 0 : i64, tpu.core_type = #tpu.core_type<tc>, window_params = [{pipeline_mode = #tpu.pipeline_mode<synchronous>, transform_indices = @transform_0, window_bounds = array<i64: 16, 40>}, {pipeline_mode = #tpu.pipeline_mode<synchronous>, transform_indices = @transform_1, window_bounds = array<i64: 576, 128>}, {pipeline_mode = #tpu.pipeline_mode<synchronous>, transform_indices = @transform_2, window_bounds = array<i64: 2, 128>}]} {
    %c0 = arith.constant 0 : index
    %c0_0 = arith.constant 0 : index
    %0 = vector.load %arg1[%c0, %c0_0] : memref<16x40xf32, #tpu.memory_space<vmem>>, vector<16x40xf32>
    %c0_1 = arith.constant 0 : index
    %c0_2 = arith.constant 0 : index
    %1 = vector.load %arg2[%c0_1, %c0_2] : memref<576x128xf32, #tpu.memory_space<vmem>>, vector<40x32xf32>
    %cst = arith.constant dense<0.000000e+00> : vector<16x32xf32>
    %2 = tpu.matmul %0, %1, %cst {dimension_numbers = #tpu.dot_dimension_numbers<[1], [0], [0], [1], [0, 0, 1, 1], [], []>} : vector<16x40xf32>, vector<40x32xf32>, vector<16x32xf32> -> vector<16x32xf32>
    %c40 = arith.constant 40 : index
    %c0_3 = arith.constant 0 : index
    %3 = vector.load %arg2[%c40, %c0_3] : memref<576x128xf32, #tpu.memory_space<vmem>>, vector<1x32xf32>
    %4 = vector.broadcast %3 : vector<1x32xf32> to vector<16x32xf32>
    %5 = arith.addf %2, %4 : vector<16x32xf32>
    %c48 = arith.constant 48 : index
    %c0_4 = arith.constant 0 : index
    %6 = vector.load %arg2[%c48, %c0_4] : memref<576x128xf32, #tpu.memory_space<vmem>>, vector<32x96xf32>
    %cst_5 = arith.constant dense<0.000000e+00> : vector<16x96xf32>
    %7 = tpu.matmul %5, %6, %cst_5 {dimension_numbers = #tpu.dot_dimension_numbers<[1], [0], [0], [1], [0, 0, 1, 1], [], []>} : vector<16x32xf32>, vector<32x96xf32>, vector<16x96xf32> -> vector<16x96xf32>
    %c80 = arith.constant 80 : index
    %c0_6 = arith.constant 0 : index
    %8 = vector.load %arg2[%c80, %c0_6] : memref<576x128xf32, #tpu.memory_space<vmem>>, vector<1x96xf32>
    %9 = vector.broadcast %8 : vector<1x96xf32> to vector<16x96xf32>
    %10 = arith.addf %7, %9 : vector<16x96xf32>
    %11 = vector.extract_strided_slice %10 {offsets = [0, 0], sizes = [16, 32], strides = [1, 1]} : vector<16x96xf32> to vector<16x32xf32>
    %12 = vector.shape_cast %11 : vector<16x32xf32> to vector<2x8x32xf32>
    %13 = vector.extract_strided_slice %10 {offsets = [0, 32], sizes = [16, 32], strides = [1, 1]} : vector<16x96xf32> to vector<16x32xf32>
    %14 = vector.shape_cast %13 : vector<16x32xf32> to vector<2x8x32xf32>
    %15 = vector.extract_strided_slice %10 {offsets = [0, 64], sizes = [16, 32], strides = [1, 1]} : vector<16x96xf32> to vector<16x32xf32>
    %16 = vector.shape_cast %15 : vector<16x32xf32> to vector<2x8x32xf32>
    %17 = vector.extract_strided_slice %12 {offsets = [0, 0, 0], sizes = [2, 8, 16], strides = [1, 1, 1]} : vector<2x8x32xf32> to vector<2x8x16xf32>
    %18 = vector.extract_strided_slice %14 {offsets = [0, 0, 0], sizes = [2, 8, 16], strides = [1, 1, 1]} : vector<2x8x32xf32> to vector<2x8x16xf32>
    "tpu.trace_start"() <{level = 10 : i32, message = "bqd,bkd->bqk"}> : () -> ()
    %cst_7 = arith.constant dense<0.000000e+00> : vector<2x8x8xf32>
    %19 = tpu.matmul %17, %18, %cst_7 {dimension_numbers = #tpu.dot_dimension_numbers<[2], [2], [1], [1], [0, 0, 0, 1, 1, 1], [0], [0]>} : vector<2x8x16xf32>, vector<2x8x16xf32>, vector<2x8x8xf32> -> vector<2x8x8xf32>
    "tpu.trace_stop"() : () -> ()
    %cst_8 = arith.constant dense<0xFF800000> : vector<2x8xf32>
    %20 = vector.multi_reduction <maximumf>, %19, %cst_8 [2] : vector<2x8x8xf32> to vector<2x8xf32>
    %21 = vector.shape_cast %20 : vector<2x8xf32> to vector<2x8x1xf32>
    %22 = vector.broadcast %21 : vector<2x8x1xf32> to vector<2x8x8xf32>
    %23 = arith.subf %19, %22 : vector<2x8x8xf32>
    %24 = math.exp %23 : vector<2x8x8xf32>
    %cst_9 = arith.constant dense<0.000000e+00> : vector<2x8xf32>
    %25 = vector.multi_reduction <add>, %24, %cst_9 [2] : vector<2x8x8xf32> to vector<2x8xf32>
    %26 = vector.shape_cast %25 : vector<2x8xf32> to vector<2x8x1xf32>
    %27 = vector.broadcast %26 : vector<2x8x1xf32> to vector<2x8x8xf32>
    %28 = arith.divf %24, %27 : vector<2x8x8xf32>
    %29 = vector.extract_strided_slice %16 {offsets = [0, 0, 0], sizes = [2, 8, 16], strides = [1, 1, 1]} : vector<2x8x32xf32> to vector<2x8x16xf32>
    "tpu.trace_start"() <{level = 10 : i32, message = "bqk,bkd->bqd"}> : () -> ()
    %cst_10 = arith.constant dense<0.000000e+00> : vector<2x8x16xf32>
    %30 = tpu.matmul %28, %29, %cst_10 {dimension_numbers = #tpu.dot_dimension_numbers<[2], [1], [1], [2], [0, 0, 0, 1, 1, 2], [0], [0]>} : vector<2x8x8xf32>, vector<2x8x16xf32>, vector<2x8x16xf32> -> vector<2x8x16xf32>
    "tpu.trace_stop"() : () -> ()
    %31 = vector.extract_strided_slice %12 {offsets = [0, 0, 16], sizes = [2, 8, 16], strides = [1, 1, 1]} : vector<2x8x32xf32> to vector<2x8x16xf32>
    %32 = vector.extract_strided_slice %14 {offsets = [0, 0, 16], sizes = [2, 8, 16], strides = [1, 1, 1]} : vector<2x8x32xf32> to vector<2x8x16xf32>
    "tpu.trace_start"() <{level = 10 : i32, message = "bqd,bkd->bqk"}> : () -> ()
    %cst_11 = arith.constant dense<0.000000e+00> : vector<2x8x8xf32>
    %33 = tpu.matmul %31, %32, %cst_11 {dimension_numbers = #tpu.dot_dimension_numbers<[2], [2], [1], [1], [0, 0, 0, 1, 1, 1], [0], [0]>} : vector<2x8x16xf32>, vector<2x8x16xf32>, vector<2x8x8xf32> -> vector<2x8x8xf32>
    "tpu.trace_stop"() : () -> ()
    %cst_12 = arith.constant dense<0xFF800000> : vector<2x8xf32>
    %34 = vector.multi_reduction <maximumf>, %33, %cst_12 [2] : vector<2x8x8xf32> to vector<2x8xf32>
    %35 = vector.shape_cast %34 : vector<2x8xf32> to vector<2x8x1xf32>
    %36 = vector.broadcast %35 : vector<2x8x1xf32> to vector<2x8x8xf32>
    %37 = arith.subf %33, %36 : vector<2x8x8xf32>
    %38 = math.exp %37 : vector<2x8x8xf32>
    %cst_13 = arith.constant dense<0.000000e+00> : vector<2x8xf32>
    %39 = vector.multi_reduction <add>, %38, %cst_13 [2] : vector<2x8x8xf32> to vector<2x8xf32>
    %40 = vector.shape_cast %39 : vector<2x8xf32> to vector<2x8x1xf32>
    %41 = vector.broadcast %40 : vector<2x8x1xf32> to vector<2x8x8xf32>
    %42 = arith.divf %38, %41 : vector<2x8x8xf32>
    %43 = vector.extract_strided_slice %16 {offsets = [0, 0, 16], sizes = [2, 8, 16], strides = [1, 1, 1]} : vector<2x8x32xf32> to vector<2x8x16xf32>
    "tpu.trace_start"() <{level = 10 : i32, message = "bqk,bkd->bqd"}> : () -> ()
    %cst_14 = arith.constant dense<0.000000e+00> : vector<2x8x16xf32>
    %44 = tpu.matmul %42, %43, %cst_14 {dimension_numbers = #tpu.dot_dimension_numbers<[2], [1], [1], [2], [0, 0, 0, 1, 1, 2], [0], [0]>} : vector<2x8x8xf32>, vector<2x8x16xf32>, vector<2x8x16xf32> -> vector<2x8x16xf32>
    "tpu.trace_stop"() : () -> ()
    %45 = tpu.concatenate %30, %44 in 2 : vector<2x8x16xf32>, vector<2x8x16xf32> -> vector<2x8x32xf32>
    %46 = vector.shape_cast %45 : vector<2x8x32xf32> to vector<16x32xf32>
    %c88 = arith.constant 88 : index
    %c0_15 = arith.constant 0 : index
    %47 = vector.load %arg2[%c88, %c0_15] : memref<576x128xf32, #tpu.memory_space<vmem>>, vector<32x32xf32>
    %cst_16 = arith.constant dense<0.000000e+00> : vector<16x32xf32>
    %48 = tpu.matmul %46, %47, %cst_16 {dimension_numbers = #tpu.dot_dimension_numbers<[1], [0], [0], [1], [0, 0, 1, 1], [], []>} : vector<16x32xf32>, vector<32x32xf32>, vector<16x32xf32> -> vector<16x32xf32>
    %c120 = arith.constant 120 : index
    %c0_17 = arith.constant 0 : index
    %49 = vector.load %arg2[%c120, %c0_17] : memref<576x128xf32, #tpu.memory_space<vmem>>, vector<1x32xf32>
    %50 = vector.broadcast %49 : vector<1x32xf32> to vector<16x32xf32>
    %51 = arith.addf %48, %50 : vector<16x32xf32>
    %52 = arith.addf %5, %51 : vector<16x32xf32>
    %c128 = arith.constant 128 : index
    %c0_18 = arith.constant 0 : index
    %53 = vector.load %arg2[%c128, %c0_18] : memref<576x128xf32, #tpu.memory_space<vmem>>, vector<1x32xf32>
    %c136 = arith.constant 136 : index
    %c0_19 = arith.constant 0 : index
    %54 = vector.load %arg2[%c136, %c0_19] : memref<576x128xf32, #tpu.memory_space<vmem>>, vector<1x32xf32>
    %cst_20 = arith.constant dense<0.000000e+00> : vector<16xf32>
    %55 = vector.multi_reduction <add>, %52, %cst_20 [1] : vector<16x32xf32> to vector<16xf32>
    %56 = vector.shape_cast %55 : vector<16xf32> to vector<16x1xf32>
    %cst_21 = arith.constant 3.200000e+01 : f32
    %57 = vector.broadcast %cst_21 : f32 to vector<16x1xf32>
    %58 = arith.divf %56, %57 : vector<16x1xf32>
    %59 = vector.broadcast %58 : vector<16x1xf32> to vector<16x32xf32>
    %60 = arith.subf %52, %59 : vector<16x32xf32>
    %61 = arith.mulf %60, %60 : vector<16x32xf32>
    %cst_22 = arith.constant dense<0.000000e+00> : vector<16xf32>
    %62 = vector.multi_reduction <add>, %61, %cst_22 [1] : vector<16x32xf32> to vector<16xf32>
    %63 = vector.shape_cast %62 : vector<16xf32> to vector<16x1xf32>
    %cst_23 = arith.constant 3.200000e+01 : f32
    %64 = vector.broadcast %cst_23 : f32 to vector<16x1xf32>
    %65 = arith.divf %63, %64 : vector<16x1xf32>
    %66 = vector.broadcast %58 : vector<16x1xf32> to vector<16x32xf32>
    %67 = arith.subf %52, %66 : vector<16x32xf32>
    %cst_24 = arith.constant 9.99999974E-6 : f32
    %68 = vector.broadcast %cst_24 : f32 to vector<16x1xf32>
    %69 = arith.addf %65, %68 : vector<16x1xf32>
    %70 = math.rsqrt %69 : vector<16x1xf32>
    %71 = vector.broadcast %70 : vector<16x1xf32> to vector<16x32xf32>
    %72 = arith.mulf %67, %71 : vector<16x32xf32>
    %73 = vector.broadcast %53 : vector<1x32xf32> to vector<16x32xf32>
    %74 = arith.mulf %72, %73 : vector<16x32xf32>
    %75 = vector.broadcast %54 : vector<1x32xf32> to vector<16x32xf32>
    %76 = arith.addf %74, %75 : vector<16x32xf32>
    %c144 = arith.constant 144 : index
    %c0_25 = arith.constant 0 : index
    %77 = vector.load %arg2[%c144, %c0_25] : memref<576x128xf32, #tpu.memory_space<vmem>>, vector<32x64xf32>
    %cst_26 = arith.constant dense<0.000000e+00> : vector<16x64xf32>
    %78 = tpu.matmul %76, %77, %cst_26 {dimension_numbers = #tpu.dot_dimension_numbers<[1], [0], [0], [1], [0, 0, 1, 1], [], []>} : vector<16x32xf32>, vector<32x64xf32>, vector<16x64xf32> -> vector<16x64xf32>
    %c176 = arith.constant 176 : index
    %c0_27 = arith.constant 0 : index
    %79 = vector.load %arg2[%c176, %c0_27] : memref<576x128xf32, #tpu.memory_space<vmem>>, vector<1x64xf32>
    %80 = vector.broadcast %79 : vector<1x64xf32> to vector<16x64xf32>
    %81 = arith.addf %78, %80 : vector<16x64xf32>
    %cst_28 = arith.constant 0.000000e+00 : f32
    %82 = vector.broadcast %cst_28 : f32 to vector<16x64xf32>
    %83 = arith.maximumf %81, %82 : vector<16x64xf32>
    %c184 = arith.constant 184 : index
    %c0_29 = arith.constant 0 : index
    %84 = vector.load %arg2[%c184, %c0_29] : memref<576x128xf32, #tpu.memory_space<vmem>>, vector<64x32xf32>
    %cst_30 = arith.constant dense<0.000000e+00> : vector<16x32xf32>
    %85 = tpu.matmul %83, %84, %cst_30 {dimension_numbers = #tpu.dot_dimension_numbers<[1], [0], [0], [1], [0, 0, 1, 1], [], []>} : vector<16x64xf32>, vector<64x32xf32>, vector<16x32xf32> -> vector<16x32xf32>
    %c248 = arith.constant 248 : index
    %c0_31 = arith.constant 0 : index
    %86 = vector.load %arg2[%c248, %c0_31] : memref<576x128xf32, #tpu.memory_space<vmem>>, vector<1x32xf32>
    %87 = vector.broadcast %86 : vector<1x32xf32> to vector<16x32xf32>
    %88 = arith.addf %85, %87 : vector<16x32xf32>
    %89 = arith.addf %76, %88 : vector<16x32xf32>
    %c256 = arith.constant 256 : index
    %c0_32 = arith.constant 0 : index
    %90 = vector.load %arg2[%c256, %c0_32] : memref<576x128xf32, #tpu.memory_space<vmem>>, vector<1x32xf32>
    %c264 = arith.constant 264 : index
    %c0_33 = arith.constant 0 : index
    %91 = vector.load %arg2[%c264, %c0_33] : memref<576x128xf32, #tpu.memory_space<vmem>>, vector<1x32xf32>
    %cst_34 = arith.constant dense<0.000000e+00> : vector<16xf32>
    %92 = vector.multi_reduction <add>, %89, %cst_34 [1] : vector<16x32xf32> to vector<16xf32>
    %93 = vector.shape_cast %92 : vector<16xf32> to vector<16x1xf32>
    %cst_35 = arith.constant 3.200000e+01 : f32
    %94 = vector.broadcast %cst_35 : f32 to vector<16x1xf32>
    %95 = arith.divf %93, %94 : vector<16x1xf32>
    %96 = vector.broadcast %95 : vector<16x1xf32> to vector<16x32xf32>
    %97 = arith.subf %89, %96 : vector<16x32xf32>
    %98 = arith.mulf %97, %97 : vector<16x32xf32>
    %cst_36 = arith.constant dense<0.000000e+00> : vector<16xf32>
    %99 = vector.multi_reduction <add>, %98, %cst_36 [1] : vector<16x32xf32> to vector<16xf32>
    %100 = vector.shape_cast %99 : vector<16xf32> to vector<16x1xf32>
    %cst_37 = arith.constant 3.200000e+01 : f32
    %101 = vector.broadcast %cst_37 : f32 to vector<16x1xf32>
    %102 = arith.divf %100, %101 : vector<16x1xf32>
    %103 = vector.broadcast %95 : vector<16x1xf32> to vector<16x32xf32>
    %104 = arith.subf %89, %103 : vector<16x32xf32>
    %cst_38 = arith.constant 9.99999974E-6 : f32
    %105 = vector.broadcast %cst_38 : f32 to vector<16x1xf32>
    %106 = arith.addf %102, %105 : vector<16x1xf32>
    %107 = math.rsqrt %106 : vector<16x1xf32>
    %108 = vector.broadcast %107 : vector<16x1xf32> to vector<16x32xf32>
    %109 = arith.mulf %104, %108 : vector<16x32xf32>
    %110 = vector.broadcast %90 : vector<1x32xf32> to vector<16x32xf32>
    %111 = arith.mulf %109, %110 : vector<16x32xf32>
    %112 = vector.broadcast %91 : vector<1x32xf32> to vector<16x32xf32>
    %113 = arith.addf %111, %112 : vector<16x32xf32>
    %c272 = arith.constant 272 : index
    %c0_39 = arith.constant 0 : index
    %114 = vector.load %arg2[%c272, %c0_39] : memref<576x128xf32, #tpu.memory_space<vmem>>, vector<32x96xf32>
    %cst_40 = arith.constant dense<0.000000e+00> : vector<16x96xf32>
    %115 = tpu.matmul %113, %114, %cst_40 {dimension_numbers = #tpu.dot_dimension_numbers<[1], [0], [0], [1], [0, 0, 1, 1], [], []>} : vector<16x32xf32>, vector<32x96xf32>, vector<16x96xf32> -> vector<16x96xf32>
    %c304 = arith.constant 304 : index
    %c0_41 = arith.constant 0 : index
    %116 = vector.load %arg2[%c304, %c0_41] : memref<576x128xf32, #tpu.memory_space<vmem>>, vector<1x96xf32>
    %117 = vector.broadcast %116 : vector<1x96xf32> to vector<16x96xf32>
    %118 = arith.addf %115, %117 : vector<16x96xf32>
    %119 = vector.extract_strided_slice %118 {offsets = [0, 0], sizes = [16, 32], strides = [1, 1]} : vector<16x96xf32> to vector<16x32xf32>
    %120 = vector.shape_cast %119 : vector<16x32xf32> to vector<2x8x32xf32>
    %121 = vector.extract_strided_slice %118 {offsets = [0, 32], sizes = [16, 32], strides = [1, 1]} : vector<16x96xf32> to vector<16x32xf32>
    %122 = vector.shape_cast %121 : vector<16x32xf32> to vector<2x8x32xf32>
    %123 = vector.extract_strided_slice %118 {offsets = [0, 64], sizes = [16, 32], strides = [1, 1]} : vector<16x96xf32> to vector<16x32xf32>
    %124 = vector.shape_cast %123 : vector<16x32xf32> to vector<2x8x32xf32>
    %125 = vector.extract_strided_slice %120 {offsets = [0, 0, 0], sizes = [2, 8, 16], strides = [1, 1, 1]} : vector<2x8x32xf32> to vector<2x8x16xf32>
    %126 = vector.extract_strided_slice %122 {offsets = [0, 0, 0], sizes = [2, 8, 16], strides = [1, 1, 1]} : vector<2x8x32xf32> to vector<2x8x16xf32>
    "tpu.trace_start"() <{level = 10 : i32, message = "bqd,bkd->bqk"}> : () -> ()
    %cst_42 = arith.constant dense<0.000000e+00> : vector<2x8x8xf32>
    %127 = tpu.matmul %125, %126, %cst_42 {dimension_numbers = #tpu.dot_dimension_numbers<[2], [2], [1], [1], [0, 0, 0, 1, 1, 1], [0], [0]>} : vector<2x8x16xf32>, vector<2x8x16xf32>, vector<2x8x8xf32> -> vector<2x8x8xf32>
    "tpu.trace_stop"() : () -> ()
    %cst_43 = arith.constant dense<0xFF800000> : vector<2x8xf32>
    %128 = vector.multi_reduction <maximumf>, %127, %cst_43 [2] : vector<2x8x8xf32> to vector<2x8xf32>
    %129 = vector.shape_cast %128 : vector<2x8xf32> to vector<2x8x1xf32>
    %130 = vector.broadcast %129 : vector<2x8x1xf32> to vector<2x8x8xf32>
    %131 = arith.subf %127, %130 : vector<2x8x8xf32>
    %132 = math.exp %131 : vector<2x8x8xf32>
    %cst_44 = arith.constant dense<0.000000e+00> : vector<2x8xf32>
    %133 = vector.multi_reduction <add>, %132, %cst_44 [2] : vector<2x8x8xf32> to vector<2x8xf32>
    %134 = vector.shape_cast %133 : vector<2x8xf32> to vector<2x8x1xf32>
    %135 = vector.broadcast %134 : vector<2x8x1xf32> to vector<2x8x8xf32>
    %136 = arith.divf %132, %135 : vector<2x8x8xf32>
    %137 = vector.extract_strided_slice %124 {offsets = [0, 0, 0], sizes = [2, 8, 16], strides = [1, 1, 1]} : vector<2x8x32xf32> to vector<2x8x16xf32>
    "tpu.trace_start"() <{level = 10 : i32, message = "bqk,bkd->bqd"}> : () -> ()
    %cst_45 = arith.constant dense<0.000000e+00> : vector<2x8x16xf32>
    %138 = tpu.matmul %136, %137, %cst_45 {dimension_numbers = #tpu.dot_dimension_numbers<[2], [1], [1], [2], [0, 0, 0, 1, 1, 2], [0], [0]>} : vector<2x8x8xf32>, vector<2x8x16xf32>, vector<2x8x16xf32> -> vector<2x8x16xf32>
    "tpu.trace_stop"() : () -> ()
    %139 = vector.extract_strided_slice %120 {offsets = [0, 0, 16], sizes = [2, 8, 16], strides = [1, 1, 1]} : vector<2x8x32xf32> to vector<2x8x16xf32>
    %140 = vector.extract_strided_slice %122 {offsets = [0, 0, 16], sizes = [2, 8, 16], strides = [1, 1, 1]} : vector<2x8x32xf32> to vector<2x8x16xf32>
    "tpu.trace_start"() <{level = 10 : i32, message = "bqd,bkd->bqk"}> : () -> ()
    %cst_46 = arith.constant dense<0.000000e+00> : vector<2x8x8xf32>
    %141 = tpu.matmul %139, %140, %cst_46 {dimension_numbers = #tpu.dot_dimension_numbers<[2], [2], [1], [1], [0, 0, 0, 1, 1, 1], [0], [0]>} : vector<2x8x16xf32>, vector<2x8x16xf32>, vector<2x8x8xf32> -> vector<2x8x8xf32>
    "tpu.trace_stop"() : () -> ()
    %cst_47 = arith.constant dense<0xFF800000> : vector<2x8xf32>
    %142 = vector.multi_reduction <maximumf>, %141, %cst_47 [2] : vector<2x8x8xf32> to vector<2x8xf32>
    %143 = vector.shape_cast %142 : vector<2x8xf32> to vector<2x8x1xf32>
    %144 = vector.broadcast %143 : vector<2x8x1xf32> to vector<2x8x8xf32>
    %145 = arith.subf %141, %144 : vector<2x8x8xf32>
    %146 = math.exp %145 : vector<2x8x8xf32>
    %cst_48 = arith.constant dense<0.000000e+00> : vector<2x8xf32>
    %147 = vector.multi_reduction <add>, %146, %cst_48 [2] : vector<2x8x8xf32> to vector<2x8xf32>
    %148 = vector.shape_cast %147 : vector<2x8xf32> to vector<2x8x1xf32>
    %149 = vector.broadcast %148 : vector<2x8x1xf32> to vector<2x8x8xf32>
    %150 = arith.divf %146, %149 : vector<2x8x8xf32>
    %151 = vector.extract_strided_slice %124 {offsets = [0, 0, 16], sizes = [2, 8, 16], strides = [1, 1, 1]} : vector<2x8x32xf32> to vector<2x8x16xf32>
    "tpu.trace_start"() <{level = 10 : i32, message = "bqk,bkd->bqd"}> : () -> ()
    %cst_49 = arith.constant dense<0.000000e+00> : vector<2x8x16xf32>
    %152 = tpu.matmul %150, %151, %cst_49 {dimension_numbers = #tpu.dot_dimension_numbers<[2], [1], [1], [2], [0, 0, 0, 1, 1, 2], [0], [0]>} : vector<2x8x8xf32>, vector<2x8x16xf32>, vector<2x8x16xf32> -> vector<2x8x16xf32>
    "tpu.trace_stop"() : () -> ()
    %153 = tpu.concatenate %138, %152 in 2 : vector<2x8x16xf32>, vector<2x8x16xf32> -> vector<2x8x32xf32>
    %154 = vector.shape_cast %153 : vector<2x8x32xf32> to vector<16x32xf32>
    %c312 = arith.constant 312 : index
    %c0_50 = arith.constant 0 : index
    %155 = vector.load %arg2[%c312, %c0_50] : memref<576x128xf32, #tpu.memory_space<vmem>>, vector<32x32xf32>
    %cst_51 = arith.constant dense<0.000000e+00> : vector<16x32xf32>
    %156 = tpu.matmul %154, %155, %cst_51 {dimension_numbers = #tpu.dot_dimension_numbers<[1], [0], [0], [1], [0, 0, 1, 1], [], []>} : vector<16x32xf32>, vector<32x32xf32>, vector<16x32xf32> -> vector<16x32xf32>
    %c344 = arith.constant 344 : index
    %c0_52 = arith.constant 0 : index
    %157 = vector.load %arg2[%c344, %c0_52] : memref<576x128xf32, #tpu.memory_space<vmem>>, vector<1x32xf32>
    %158 = vector.broadcast %157 : vector<1x32xf32> to vector<16x32xf32>
    %159 = arith.addf %156, %158 : vector<16x32xf32>
    %160 = arith.addf %113, %159 : vector<16x32xf32>
    %c352 = arith.constant 352 : index
    %c0_53 = arith.constant 0 : index
    %161 = vector.load %arg2[%c352, %c0_53] : memref<576x128xf32, #tpu.memory_space<vmem>>, vector<1x32xf32>
    %c360 = arith.constant 360 : index
    %c0_54 = arith.constant 0 : index
    %162 = vector.load %arg2[%c360, %c0_54] : memref<576x128xf32, #tpu.memory_space<vmem>>, vector<1x32xf32>
    %cst_55 = arith.constant dense<0.000000e+00> : vector<16xf32>
    %163 = vector.multi_reduction <add>, %160, %cst_55 [1] : vector<16x32xf32> to vector<16xf32>
    %164 = vector.shape_cast %163 : vector<16xf32> to vector<16x1xf32>
    %cst_56 = arith.constant 3.200000e+01 : f32
    %165 = vector.broadcast %cst_56 : f32 to vector<16x1xf32>
    %166 = arith.divf %164, %165 : vector<16x1xf32>
    %167 = vector.broadcast %166 : vector<16x1xf32> to vector<16x32xf32>
    %168 = arith.subf %160, %167 : vector<16x32xf32>
    %169 = arith.mulf %168, %168 : vector<16x32xf32>
    %cst_57 = arith.constant dense<0.000000e+00> : vector<16xf32>
    %170 = vector.multi_reduction <add>, %169, %cst_57 [1] : vector<16x32xf32> to vector<16xf32>
    %171 = vector.shape_cast %170 : vector<16xf32> to vector<16x1xf32>
    %cst_58 = arith.constant 3.200000e+01 : f32
    %172 = vector.broadcast %cst_58 : f32 to vector<16x1xf32>
    %173 = arith.divf %171, %172 : vector<16x1xf32>
    %174 = vector.broadcast %166 : vector<16x1xf32> to vector<16x32xf32>
    %175 = arith.subf %160, %174 : vector<16x32xf32>
    %cst_59 = arith.constant 9.99999974E-6 : f32
    %176 = vector.broadcast %cst_59 : f32 to vector<16x1xf32>
    %177 = arith.addf %173, %176 : vector<16x1xf32>
    %178 = math.rsqrt %177 : vector<16x1xf32>
    %179 = vector.broadcast %178 : vector<16x1xf32> to vector<16x32xf32>
    %180 = arith.mulf %175, %179 : vector<16x32xf32>
    %181 = vector.broadcast %161 : vector<1x32xf32> to vector<16x32xf32>
    %182 = arith.mulf %180, %181 : vector<16x32xf32>
    %183 = vector.broadcast %162 : vector<1x32xf32> to vector<16x32xf32>
    %184 = arith.addf %182, %183 : vector<16x32xf32>
    %c368 = arith.constant 368 : index
    %c0_60 = arith.constant 0 : index
    %185 = vector.load %arg2[%c368, %c0_60] : memref<576x128xf32, #tpu.memory_space<vmem>>, vector<32x64xf32>
    %cst_61 = arith.constant dense<0.000000e+00> : vector<16x64xf32>
    %186 = tpu.matmul %184, %185, %cst_61 {dimension_numbers = #tpu.dot_dimension_numbers<[1], [0], [0], [1], [0, 0, 1, 1], [], []>} : vector<16x32xf32>, vector<32x64xf32>, vector<16x64xf32> -> vector<16x64xf32>
    %c400 = arith.constant 400 : index
    %c0_62 = arith.constant 0 : index
    %187 = vector.load %arg2[%c400, %c0_62] : memref<576x128xf32, #tpu.memory_space<vmem>>, vector<1x64xf32>
    %188 = vector.broadcast %187 : vector<1x64xf32> to vector<16x64xf32>
    %189 = arith.addf %186, %188 : vector<16x64xf32>
    %cst_63 = arith.constant 0.000000e+00 : f32
    %190 = vector.broadcast %cst_63 : f32 to vector<16x64xf32>
    %191 = arith.maximumf %189, %190 : vector<16x64xf32>
    %c408 = arith.constant 408 : index
    %c0_64 = arith.constant 0 : index
    %192 = vector.load %arg2[%c408, %c0_64] : memref<576x128xf32, #tpu.memory_space<vmem>>, vector<64x32xf32>
    %cst_65 = arith.constant dense<0.000000e+00> : vector<16x32xf32>
    %193 = tpu.matmul %191, %192, %cst_65 {dimension_numbers = #tpu.dot_dimension_numbers<[1], [0], [0], [1], [0, 0, 1, 1], [], []>} : vector<16x64xf32>, vector<64x32xf32>, vector<16x32xf32> -> vector<16x32xf32>
    %c472 = arith.constant 472 : index
    %c0_66 = arith.constant 0 : index
    %194 = vector.load %arg2[%c472, %c0_66] : memref<576x128xf32, #tpu.memory_space<vmem>>, vector<1x32xf32>
    %195 = vector.broadcast %194 : vector<1x32xf32> to vector<16x32xf32>
    %196 = arith.addf %193, %195 : vector<16x32xf32>
    %197 = arith.addf %184, %196 : vector<16x32xf32>
    %c480 = arith.constant 480 : index
    %c0_67 = arith.constant 0 : index
    %198 = vector.load %arg2[%c480, %c0_67] : memref<576x128xf32, #tpu.memory_space<vmem>>, vector<1x32xf32>
    %c488 = arith.constant 488 : index
    %c0_68 = arith.constant 0 : index
    %199 = vector.load %arg2[%c488, %c0_68] : memref<576x128xf32, #tpu.memory_space<vmem>>, vector<1x32xf32>
    %cst_69 = arith.constant dense<0.000000e+00> : vector<16xf32>
    %200 = vector.multi_reduction <add>, %197, %cst_69 [1] : vector<16x32xf32> to vector<16xf32>
    %201 = vector.shape_cast %200 : vector<16xf32> to vector<16x1xf32>
    %cst_70 = arith.constant 3.200000e+01 : f32
    %202 = vector.broadcast %cst_70 : f32 to vector<16x1xf32>
    %203 = arith.divf %201, %202 : vector<16x1xf32>
    %204 = vector.broadcast %203 : vector<16x1xf32> to vector<16x32xf32>
    %205 = arith.subf %197, %204 : vector<16x32xf32>
    %206 = arith.mulf %205, %205 : vector<16x32xf32>
    %cst_71 = arith.constant dense<0.000000e+00> : vector<16xf32>
    %207 = vector.multi_reduction <add>, %206, %cst_71 [1] : vector<16x32xf32> to vector<16xf32>
    %208 = vector.shape_cast %207 : vector<16xf32> to vector<16x1xf32>
    %cst_72 = arith.constant 3.200000e+01 : f32
    %209 = vector.broadcast %cst_72 : f32 to vector<16x1xf32>
    %210 = arith.divf %208, %209 : vector<16x1xf32>
    %211 = vector.broadcast %203 : vector<16x1xf32> to vector<16x32xf32>
    %212 = arith.subf %197, %211 : vector<16x32xf32>
    %cst_73 = arith.constant 9.99999974E-6 : f32
    %213 = vector.broadcast %cst_73 : f32 to vector<16x1xf32>
    %214 = arith.addf %210, %213 : vector<16x1xf32>
    %215 = math.rsqrt %214 : vector<16x1xf32>
    %216 = vector.broadcast %215 : vector<16x1xf32> to vector<16x32xf32>
    %217 = arith.mulf %212, %216 : vector<16x32xf32>
    %218 = vector.broadcast %198 : vector<1x32xf32> to vector<16x32xf32>
    %219 = arith.mulf %217, %218 : vector<16x32xf32>
    %220 = vector.broadcast %199 : vector<1x32xf32> to vector<16x32xf32>
    %221 = arith.addf %219, %220 : vector<16x32xf32>
    %c496 = arith.constant 496 : index
    %c0_74 = arith.constant 0 : index
    %222 = vector.load %arg2[%c496, %c0_74] : memref<576x128xf32, #tpu.memory_space<vmem>>, vector<32x1xf32>
    %cst_75 = arith.constant dense<0.000000e+00> : vector<16x1xf32>
    %223 = tpu.matmul %221, %222, %cst_75 {dimension_numbers = #tpu.dot_dimension_numbers<[1], [0], [0], [1], [0, 0, 1, 1], [], []>} : vector<16x32xf32>, vector<32x1xf32>, vector<16x1xf32> -> vector<16x1xf32>
    %c528 = arith.constant 528 : index
    %c0_76 = arith.constant 0 : index
    %224 = vector.load %arg2[%c528, %c0_76] : memref<576x128xf32, #tpu.memory_space<vmem>>, vector<1x1xf32>
    %225 = vector.broadcast %224 : vector<1x1xf32> to vector<16x1xf32>
    %226 = arith.addf %223, %225 : vector<16x1xf32>
    %227 = vector.shape_cast %226 : vector<16x1xf32> to vector<2x8x1xf32>
    %cst_77 = arith.constant dense<0xFF800000> : vector<2x1xf32>
    %228 = vector.multi_reduction <maximumf>, %227, %cst_77 [1] : vector<2x8x1xf32> to vector<2x1xf32>
    %229 = vector.shape_cast %228 : vector<2x1xf32> to vector<2x1x1xf32>
    %230 = vector.broadcast %229 : vector<2x1x1xf32> to vector<2x8x1xf32>
    %231 = arith.subf %227, %230 : vector<2x8x1xf32>
    %232 = math.exp %231 : vector<2x8x1xf32>
    %cst_78 = arith.constant dense<0.000000e+00> : vector<2x1xf32>
    %233 = vector.multi_reduction <add>, %232, %cst_78 [1] : vector<2x8x1xf32> to vector<2x1xf32>
    %234 = vector.shape_cast %233 : vector<2x1xf32> to vector<2x1x1xf32>
    %235 = vector.broadcast %234 : vector<2x1x1xf32> to vector<2x8x1xf32>
    %236 = arith.divf %232, %235 : vector<2x8x1xf32>
    %237 = vector.shape_cast %221 : vector<16x32xf32> to vector<2x8x32xf32>
    %238 = vector.broadcast %236 : vector<2x8x1xf32> to vector<2x8x32xf32>
    %239 = arith.mulf %238, %237 : vector<2x8x32xf32>
    %cst_79 = arith.constant dense<0.000000e+00> : vector<2x32xf32>
    %240 = vector.multi_reduction <add>, %239, %cst_79 [1] : vector<2x8x32xf32> to vector<2x32xf32>
    %c536 = arith.constant 536 : index
    %c0_80 = arith.constant 0 : index
    %241 = vector.load %arg2[%c536, %c0_80] : memref<576x128xf32, #tpu.memory_space<vmem>>, vector<32x128xf32>
    %c568 = arith.constant 568 : index
    %c0_81 = arith.constant 0 : index
    %242 = vector.load %arg2[%c568, %c0_81] : memref<576x128xf32, #tpu.memory_space<vmem>>, vector<1x128xf32>
    %cst_82 = arith.constant dense<0.000000e+00> : vector<2x128xf32>
    %243 = tpu.matmul %240, %241, %cst_82 {dimension_numbers = #tpu.dot_dimension_numbers<[1], [0], [0], [1], [0, 0, 1, 1], [], []>} : vector<2x32xf32>, vector<32x128xf32>, vector<2x128xf32> -> vector<2x128xf32>
    %244 = vector.broadcast %242 : vector<1x128xf32> to vector<2x128xf32>
    %245 = arith.addf %243, %244 : vector<2x128xf32>
    %c0_83 = arith.constant 0 : index
    %c0_84 = arith.constant 0 : index
    %246 = vector.load %arg3[%c0_83, %c0_84] : memref<2x128xf32, #tpu.memory_space<vmem>>, vector<2x128xf32>
    tpu.vector_store %arg3[%c0_83, %c0_84], %245 {strides = array<i32>} : memref<2x128xf32, #tpu.memory_space<vmem>>, vector<2x128xf32>,
    return
  }
  func.func @transform_0(%arg0: i32) -> (i32, i32) {
    %c0_i32 = arith.constant 0 : i32
    %c0_i32_0 = arith.constant 0 : i32
    %c0_i32_1 = arith.constant 0 : i32
    return %c0_i32, %c0_i32_0 : i32, i32
  }
  func.func @transform_1(%arg0: i32) -> (i32, i32) {
    %c0_i32 = arith.constant 0 : i32
    %c0_i32_0 = arith.constant 0 : i32
    %c0_i32_1 = arith.constant 0 : i32
    return %c0_i32, %c0_i32_0 : i32, i32
  }
  func.func @transform_2(%arg0: i32) -> (i32, i32) {
    %c0_i32 = arith.constant 0 : i32
    %c0_i32_0 = arith.constant 0 : i32
    %c0_i32_1 = arith.constant 0 : i32
    return %c0_i32, %c0_i32_0 : i32, i32
  }
}

</mosaic_0001>

<bundles_post_ra>
// kernel: tpu_custom_call.1
= control target key start
LH: loop header
LB: loop body
LE: loop exit
PB: predicated region body
PF: predicated region fallthrough
CT: control target
= control target key end

     0   :  { %7 = vsyncpa [#allocation3], 0  ;;  %s3554_s0 = inlined_call_operand.hbm [shape: f32[16,40], index: 0, kind: input, shape index: {}]   ;;  %s3555_s1 = inlined_call_operand.hbm [shape: f32[576,128], index: 1, kind: input, shape index: {}]   ;;  %s3556_s2 = inlined_call_operand.hbm [shape: f32[2,128], index: 2, kind: output, shape index: {}]  }
   0x1   :  { %8 = vsyncpa [#allocation6], 0 }
   0x2   :  { %9 = vsyncpa [#allocation4], 0  ;;  %s3268_s9 = smov [#allocation2]   ;;  %s3196_s13 = scalar_lea.hbm %s3554_s0, 256 }
   0x3   :  { %s15_s10 = sshll.u32 %s3268_s9, 4  ;;  %p3197_p0 = scmp.ne.s32.totalorder %s3554_s0, %s3196_s13  ;;  %s16_s10 = int_to_ptr.vmem [resolvable:$true] %s15_s10 }
   0x4   :  { %p3200_p1 = scmp.lt.u32.totalorder %s3196_s13, %s3554_s0 }
   0x6   :  { %p3202_p2 = pnand %p3200_p1, %p3197_p0 }
   0x8   :  { %3205 = shalt.err (!%p3202_p2)
}
   0x9   :  { %s3206_s18 = scalar_lea.vmem %s16_s10, 256  ;;  %p3211_p4 = scmp.lt.s32.totalorder %s16_s10, %s16_s10 }
   0xa   :  { %p3207_p3 = scmp.ne.s32.totalorder %s16_s10, %s3206_s18  ;;  %p3212_p5 = scmp.lt.s32.totalorder %s3206_s18, %s3206_s18 }
   0xc   :  { %p3213_p6 = por %p3212_p5, %p3211_p4 }
   0xe   :  { %p3214_p7 = pnand %p3213_p6, %p3207_p3 }
  0x10   :  { %3217 = shalt.err (!%p3214_p7)
}
  0x11   :  { %s3269_s19 = smov 128   ;;  %s3270_s20 = smov 8  }
  0x12   :  { %21 = dma.hbm_to_vmem [thread:$0]  %s3554_s0, 256, %s16_s10, [#allocation3], %s3269_s19, %s3269_s19, %s3270_s20  }
  0x13   :  { %s3271_s23 = smov [#allocation5]   ;;  %s3218_s27 = scalar_lea.hbm %s3555_s1, 9216 }
  0x14   :  { %s27_s24 = sshll.u32 %s3271_s23, 4  ;;  %p3219_p8 = scmp.ne.s32.totalorder %s3555_s1, %s3218_s27  ;;  %s28_s24 = int_to_ptr.vmem [resolvable:$true] %s27_s24 }
  0x15   :  { %p3222_p9 = scmp.lt.u32.totalorder %s3218_s27, %s3555_s1 }
  0x17   :  { %p3224_p10 = pnand %p3222_p9, %p3219_p8 }
  0x19   :  { %3227 = shalt.err (!%p3224_p10)
}
  0x1a   :  { %s3228_s4 = scalar_lea.vmem %s28_s24, 9216  ;;  %p3233_p12 = scmp.lt.s32.totalorder %s28_s24, %s28_s24 }
  0x1b   :  { %p3229_p11 = scmp.ne.s32.totalorder %s28_s24, %s3228_s4  ;;  %p3234_p13 = scmp.lt.s32.totalorder %s3228_s4, %s3228_s4 }
  0x1d   :  { %p3235_p0 = por %p3234_p13, %p3233_p12 }
  0x1f   :  { %p3236_p1 = pnand %p3235_p0, %p3229_p11 }
  0x21   :  { %3239 = shalt.err (!%p3236_p1)
}
  0x22   :  { %33 = dma.hbm_to_vmem [thread:$0]  %s3555_s1, 9216, %s28_s24, [#allocation6], %s3269_s19, %s3269_s19, %s3270_s20  }
  0x23   :  { %3262 = dma.done.wait [#allocation3], 256  }
  0x24   :  { %3263 = vsyncadd [#allocation3], 4294967040 }
  0x25   :  { %3264 = dma.done.wait [#allocation6], 9216  }
  0x26   :  { %3265 = vsyncadd [#allocation6], 4294958080  ;;  %vm52_vm0 = vcmask 326656   ;;  %v42_v0 = vld [vmem:[#allocation5] sm:$0xff]  ;;  %v43_v1 = vld [vmem:[#allocation5 + $0x8] sm:$0xff]  ;;  %vm143_vm1 = vcmask 261120  }
  0x27   :  { %v44_v2 = vld [vmem:[#allocation5 + $0x10] sm:$0xff]  ;;  %v3021_v3 = vpack.c.bf16 %v43_v1, %v42_v0  ;;  %v45_v4 = vld [vmem:[#allocation5 + $0x18] sm:$0xff]  ;;  %v46_v10 = vld [vmem:[#allocation5 + $0x20] sm:$0xff]  ;;  %v3272_v20 = vmov 0.0   ;;  %vm3273_vm2 = vmmov 0   ;;  %s3274_s1 = smov 96  }
  0x28   :  { %v40_v5 = vld [vmem:[#allocation2] sm:$0xff]  ;;  %v3025_v6 = vpack.c.bf16 %v45_v4, %v44_v2  ;;  %v135_v8 = vld [vmem:[#allocation5 + $0x38] sm:$0xff]  ;;  %v136_v12 = vld [vmem:[#allocation5 + $0x40] sm:$0xff]  ;;  %vm228_vm3 = vcmask 130048   ;;  %vm380_vm4 = vcmask 64512   ;;  %s3275_s6 = smov 64  }
  0x29   :  { %2812 = vmatprep.mubr.msk.f32.mxu0 %vm52_vm0, %v40_v5  ;;  %v134_v7 = vld [vmem:[#allocation5 + $0x30] sm:$0xff]  ;;  %3022 = vmatprep.subr.bf16.mxu0 %v3021_v3  ;;  %v41_v11 = vld [vmem:[#allocation2 + $0x8] sm:$0xff]  ;;  %v137_v13 = vld [vmem:[#allocation5 + $0x48] sm:$0xff]  ;;  %s3276_s7 = smov 80   ;;  %s3277_s8 = smov 112   ;;  %vm1133_vm5 = vcmask 523264  }
  0x2a   :  { %v3029_v9 = vpack.c.bf16 %v135_v8, %v134_v7  ;;  %3024 = vmatpush3.bf16.msra.mxu0 %v3021_v3  ;;  %v3033_v14 = vpack.c.bf16 %v137_v13, %v136_v12  ;;  %v2632_v15 = vld [vmem:[#allocation5 + $0x28] ss:$0 sm:$0xff]  ;;  %v2635_v21 = vld [vmem:[#allocation5 + $0x50] ss:$0 sm:$0xff]  ;;  %s3278_s9 = smov 48   ;;  %s3279_s10 = smov 16  }
  0x2b   :  { %3026 = vmatprep.subr.bf16.mxu0 %v3025_v6  ;;  %vm2465_vm6 = vcmask 7168   ;;  %vm2541_vm7 = vcmask 1041409   ;;  %s3282_s11 = smov [#allocation7]  }
  0x2c   :  { %3030 = vmatprep.subr.bf16.mxu1 %v3029_v9  ;;  %s2622_s12 = sshll.u32 %s3282_s11, 4  ;;  %s2623_s12 = int_to_ptr.vmem [resolvable:$true] %s2622_s12 }
  0x2d   :  { %3032 = vmatpush3.bf16.msra.mxu1 %v3029_v9  ;;  %s3240_s13 = scalar_lea.vmem %s2623_s12, 32  ;;  %p3245_p3 = scmp.lt.s32.totalorder %s2623_s12, %s2623_s12 }
  0x2e   :  { %3028 = vmatpush3.bf16.msra.mxu0 %v3025_v6  ;;  %3034 = vmatprep.subr.bf16.mxu1 %v3033_v14  ;;  %p3241_p2 = scmp.ne.s32.totalorder %s2623_s12, %s3240_s13  ;;  %p3246_p4 = scmp.lt.s32.totalorder %s3240_s13, %s3240_s13 }
  0x2f   :  { %2810 = vmatprep.subr.mxu0 %v46_v10 }
  0x30   :  { %p3247_p5 = por %p3246_p4, %p3245_p3 }
  0x31   :  { %3036 = vmatpush3.bf16.msra.mxu1 %v3033_v14 }
  0x32   :  { %2811 = vmatpush3.msra.mxu0 %v46_v10  ;;  %2826 = vmatprep.subr.mxu1 %v3272_v20  ;;  %p3248_p6 = pnand %p3247_p5, %p3241_p2 }
  0x33   :  { %2813 = vmatmul.mubr.msk.f32.vlgmr.msra.gmra.mrb[0].mxu0 %vm52_vm0, %v41_v11  ;;  %2831 = vmatprep.subr.mxu0 %v3272_v20 }
  0x34   :  { %2833 = vmatprep.mubr.msk.f32.mxu0 %vm3273_vm2, %v3272_v20 }
 0x106   :  { %v2814_v16 = vpop.f32.mrb[0].mxu0 }
 0x107   :  { %v125_v17 = vpop.f32.mrb[1].mxu0  ;;  %v3326_v19 = vadd.f32 %v2814_v16, %v2632_v15 }
 0x108   :  { %v3324_v18 = vadd.f32 %v2632_v15, %v125_v17 }
 0x10a   :  { %2823 = vmatprep.mubr.msk.f32.mxu1 %vm143_vm1, %v3324_v18 }
 0x10b   :  { %2824 = vmatmul.mubr.msk.f32.vlgmr.msra.gmra.mrb[0].mxu1 %vm143_vm1, %v3326_v19 }
 0x10c   :  { %2828 = vmatprep.mubr.msk.f32.mxu1 %vm3273_vm2, %v3272_v20 }
 0x1de   :  { %v2825_v22 = vpop.f32.mrb[0].mxu1 }
 0x1df   :  { %v216_v23 = vpop.f32.mrb[1].mxu1  ;;  %v3342_v25 = vadd.f32 %v2825_v22, %v2635_v21 }
 0x1e0   :  { %v3338_v24 = vadd.f32 %v2635_v21, %v216_v23  ;;  %v895_v23 = vld [vmem:[#allocation5 + $0x58] sm:$0xff] }
 0x1e2   :  { %226 = vrot.lane.b32.xlu0 %v3338_v24, %s3274_s1 }
 0x1e6   :  { %304 = vrot.lane.b32.xlu0 %v3342_v25, %s3274_s1 }
 0x254   :  { %v227_v26 = vpop.permute.xlu0 %226 }
 0x255   :  { %2827 = vmatpush3.xpose.msk.msra.mxu1 %vm228_vm3, %v227_v26 }
 0x256   :  { %2836 = vmatprep.subr.mxu1 %v3272_v20 }
 0x258   :  { %2829 = vmatmul.mubr.msk.f32.vlgmr.msra.gmra.mrb[2].mxu1 %vm228_vm3, %v3338_v24  ;;  %v305_v27 = vpop.permute.xlu0 %304 }
 0x259   :  { %2832 = vmatpush3.xpose.msk.msra.mxu0 %vm228_vm3, %v305_v27  ;;  %2838 = vmatprep.mubr.msk.f32.mxu1 %vm3273_vm2, %v3272_v20  ;;  %v898_v27 = vld [vmem:[#allocation5 + $0x70] sm:$0xff] }
 0x25a   :  { %2841 = vmatprep.subr.mxu0 %v3272_v20 }
 0x25c   :  { %2834 = vmatmul.mubr.msk.f32.vlgmr.msra.gmra.mrb[2].mxu0 %vm228_vm3, %v3342_v25 }
 0x25d   :  { %2843 = vmatprep.mubr.msk.f32.mxu0 %vm3273_vm2, %v3272_v20 }
 0x32b   :  { %v299_v28 = vpop.f32.mrb[2].mxu1 }
 0x32c   :  { %v2830_v29 = vpop.f32.mrb[3].mxu1  ;;  %v381_v30 = vsel %vm380_vm4, %v299_v28, -inf }
 0x32d   :  { %382 = vmax.xlane.f32.xlu1 %v381_v30 }
 0x32f   :  { %v376_v31 = vpop.f32.mrb[2].mxu0 }
 0x330   :  { %v2835_v32 = vpop.f32.mrb[3].mxu0  ;;  %v384_v33 = vsel %vm380_vm4, %v376_v31, -inf }
 0x331   :  { %385 = vmax.xlane.f32.xlu1 %v384_v33 }
 0x342   :  { %403 = vrot.lane.b32.xlu1 %v3338_v24, %s3275_s6 }
 0x346   :  { %479 = vrot.lane.b32.xlu1 %v3342_v25, %s3275_s6 }
 0x34a   :  { %557 = vrot.lane.b32.xlu1 %v3338_v24, %s3276_s7 }
 0x34e   :  { %635 = vrot.lane.b32.xlu1 %v3342_v25, %s3276_s7 }
 0x3ba   :  { %v383_v34 = vpop.xlane.xlu1 %382 }
 0x3bb   :  { %v387_v35 = vsub.f32 %v299_v28, %v383_v34 }
 0x3bd   :  { %v389_v36 = vmul.f32 1.442695, %v387_v35 }
 0x3be   :  { %v386_v37 = vpop.xlane.xlu1 %385 }
 0x3bf   :  { %3140 = vpow2.f32 %v389_v36  ;;  %v388_v38 = vsub.f32 %v376_v31, %v386_v37  ;;  %v2650_v37 = vld [vmem:[#allocation5 + $0x78] ss:$0 sm:$0xff] }
 0x3c1   :  { %v391_v39 = vmul.f32 1.442695, %v388_v38 }
 0x3c2   :  { %v404_v40 = vpop.permute.xlu1 %403 }
 0x3c3   :  { %3142 = vpow2.f32 %v391_v39  ;;  %2837 = vmatpush3.msra.mxu1 %v404_v40 }
 0x3c4   :  { %2846 = vmatprep.subr.mxu1 %v3272_v20 }
 0x3c6   :  { %v480_v41 = vpop.permute.xlu1 %479 }
 0x3c7   :  { %2842 = vmatpush3.msra.mxu0 %v480_v41 }
 0x3c8   :  { %2851 = vmatprep.subr.mxu0 %v3272_v20 }
 0x3c9   :  { %v3141_v42 = vpop.eup %3140 }
 0x3ca   :  { %v393_v43 = vsel %vm380_vm4, %v3141_v42, 0.0  ;;  %v558_v46 = vpop.permute.xlu1 %557 }
 0x3cb   :  { %394 = vadd.xlane.f32.xlu0 %v393_v43 }
 0x3cd   :  { %v3143_v44 = vpop.eup %3142 }
 0x3ce   :  { %v396_v45 = vsel %vm380_vm4, %v3143_v44, 0.0  ;;  %v636_v47 = vpop.permute.xlu1 %635 }
 0x3cf   :  { %397 = vadd.xlane.f32.xlu1 %v396_v45 }
 0x3e0   :  { %633 = vrot.lane.b32.xlu1 %v3342_v25, %s3277_s8 }
 0x3e1   :  { %555 = vrot.lane.b32.xlu0 %v3338_v24, %s3277_s8 }
 0x458   :  { %v395_v48 = vpop.xlane.xlu0 %394 }
 0x459   :  { %3144 = vrcp.f32 %v395_v48 }
 0x45c   :  { %v398_v49 = vpop.xlane.xlu1 %397  ;;  %v556_v54 = vpop.permute.xlu0 %555 }
 0x45d   :  { %3146 = vrcp.f32 %v398_v49 }
 0x460   :  { %v634_v55 = vpop.permute.xlu1 %633 }
 0x463   :  { %v3145_v50 = vpop.eup %3144 }
 0x464   :  { %v400_v51 = vmul.f32 %v3145_v50, %v3141_v42 }
 0x466   :  { %2839 = vmatmul.mubr.msk.f32.vlgmr.msra.gmra.mrb[4].mxu1 %vm380_vm4, %v400_v51 }
 0x467   :  { %v3147_v52 = vpop.eup %3146  ;;  %2847 = vmatpush3.xpose.msk.msra.mxu1 %vm228_vm3, %v558_v46  ;;  %2848 = vmatprep.mubr.msk.f32.mxu1 %vm3273_vm2, %v3272_v20 }
 0x468   :  { %v402_v53 = vmul.f32 %v3147_v52, %v3143_v44  ;;  %2856 = vmatprep.subr.mxu1 %v3272_v20 }
 0x46a   :  { %2844 = vmatmul.mubr.msk.f32.vlgmr.msra.gmra.mrb[4].mxu0 %vm380_vm4, %v402_v53  ;;  %2849 = vmatmul.mubr.msk.f32.vlgmr.msra.gmra.mrb[6].mxu1 %vm228_vm3, %v556_v54 }
 0x46b   :  { %2852 = vmatpush3.xpose.msk.msra.mxu0 %vm228_vm3, %v636_v47  ;;  %2853 = vmatprep.mubr.msk.f32.mxu0 %vm3273_vm2, %v3272_v20 }
 0x46c   :  { %2861 = vmatprep.subr.mxu0 %v3272_v20  ;;  %2858 = vmatprep.mubr.msk.f32.mxu1 %vm3273_vm2, %v3272_v20 }
 0x46e   :  { %2854 = vmatmul.mubr.msk.f32.vlgmr.msra.gmra.mrb[6].mxu0 %vm228_vm3, %v634_v55  ;;  %v1029_v55 = vld [vmem:[#allocation5 + $0x98] sm:$0xff] }
 0x46f   :  { %2863 = vmatprep.mubr.msk.f32.mxu0 %vm3273_vm2, %v3272_v20 }
 0x539   :  { %v475_v56 = vpop.f32.mrb[4].mxu1 }
 0x53a   :  { %v2840_v57 = vpop.f32.mrb[5].mxu1 }
 0x53b   :  { %v1030_v57 = vld [vmem:[#allocation5 + $0xa0] sm:$0xff] }
 0x53d   :  { %v3392_v58 = vpop.f32.mrb[4].mxu0  ;;  %v629_v59 = vpop.f32.mrb[6].mxu1 }
 0x53e   :  { %v2845_v60 = vpop.f32.mrb[5].mxu0  ;;  %v2850_v61 = vpop.f32.mrb[7].mxu1  ;;  %v711_v62 = vsel %vm380_vm4, %v629_v59, -inf }
 0x53f   :  { %712 = vmax.xlane.f32.xlu1 %v711_v62  ;;  %v1120_v60 = vld [vmem:[#allocation5 + $0xb8] sm:$0xff]  ;;  %v1121_v61 = vld [vmem:[#allocation5 + $0xc0] sm:$0xff]  ;;  %v1122_v62 = vld [vmem:[#allocation5 + $0xc8] sm:$0xff] }
 0x541   :  { %v707_v63 = vpop.f32.mrb[6].mxu0 }
 0x542   :  { %v2855_v0 = vpop.f32.mrb[7].mxu0  ;;  %v714_v1 = vsel %vm380_vm4, %v707_v63, -inf }
 0x543   :  { %715 = vmax.xlane.f32.xlu0 %v714_v1  ;;  %v1123_v0 = vld [vmem:[#allocation5 + $0xd0] sm:$0xff] }
 0x544   :  { %v3057_v1 = vpack.c.bf16 %v1123_v0, %v1122_v62  ;;  %v2661_v0 = vld [vmem:[#allocation5 + $0x100] ss:$0 sm:$0xff] }
 0x559   :  { %809 = vrot.lane.b32.xlu0 %v3342_v25, %s3278_s9  ;;  %v896_v25 = vld [vmem:[#allocation5 + $0x60] sm:$0xff] }
 0x55a   :  { %v3037_v26 = vpack.c.bf16 %v896_v25, %v895_v23  ;;  %v1126_v25 = vld [vmem:[#allocation5 + $0xe8] sm:$0xff] }
 0x5cc   :  { %v713_v2 = vpop.xlane.xlu1 %712 }
 0x5cd   :  { %v717_v3 = vsub.f32 %v629_v59, %v713_v2  ;;  %v1124_v2 = vld [vmem:[#allocation5 + $0xd8] sm:$0xff] }
 0x5cf   :  { %v719_v6 = vmul.f32 1.442695, %v717_v3  ;;  %v1125_v3 = vld [vmem:[#allocation5 + $0xe0] sm:$0xff] }
 0x5d0   :  { %v716_v4 = vpop.xlane.xlu0 %715 }
 0x5d1   :  { %v718_v5 = vsub.f32 %v707_v63, %v716_v4  ;;  %v3053_v63 = vpack.c.bf16 %v1121_v61, %v1120_v60  ;;  %v3061_v4 = vpack.c.bf16 %v1125_v3, %v1124_v2 }
 0x5d3   :  { %v721_v7 = vmul.f32 1.442695, %v718_v5 }
 0x5d4   :  { %v810_v8 = vpop.permute.xlu0 %809 }
 0x5d5   :  { %3148 = vpow2.f32 %v721_v7  ;;  %2862 = vmatpush3.msra.mxu0 %v810_v8 }
 0x5d6   :  { %3150 = vpow2.f32 %v719_v6 }
 0x5df   :  { %v3149_v9 = vpop.eup %3148 }
 0x5e0   :  { %v726_v10 = vsel %vm380_vm4, %v3149_v9, 0.0  ;;  %v3151_v11 = vpop.eup %3150 }
 0x5e1   :  { %727 = vadd.xlane.f32.xlu1 %v726_v10  ;;  %v723_v12 = vsel %vm380_vm4, %v3151_v11, 0.0 }
 0x5e5   :  { %724 = vadd.xlane.f32.xlu1 %v723_v12  ;;  %v2653_v12 = vld [vmem:[#allocation5 + $0x80] ss:$0 sm:$0xff] }
 0x5f6   :  { %733 = vrot.lane.b32.xlu1 %v3338_v24, %s3278_s9  ;;  %v897_v24 = vld [vmem:[#allocation5 + $0x68] sm:$0xff] }
 0x5f7   :  { %v3041_v28 = vpack.c.bf16 %v898_v27, %v897_v24  ;;  %v2655_v27 = vld [vmem:[#allocation5 + $0xb0] ss:$0 sm:$0xff] }
 0x66e   :  { %v728_v13 = vpop.xlane.xlu1 %727 }
 0x66f   :  { %3152 = vrcp.f32 %v728_v13 }
 0x672   :  { %v725_v14 = vpop.xlane.xlu1 %724 }
 0x673   :  { %3154 = vrcp.f32 %v725_v14  ;;  %v2654_v14 = vld [vmem:[#allocation5 + $0x88] ss:$0 sm:$0xff] }
 0x676   :  { %v734_v15 = vpop.permute.xlu1 %733 }
 0x677   :  { %2857 = vmatpush3.msra.mxu1 %v734_v15 }
 0x678   :  { %3038 = vmatprep.subr.bf16.mxu1 %v3037_v26 }
 0x679   :  { %v3153_v16 = vpop.eup %3152 }
 0x67a   :  { %v732_v17 = vmul.f32 %v3153_v16, %v3149_v9 }
 0x67c   :  { %2864 = vmatmul.mubr.msk.f32.vlgmr.msra.gmra.mrb[8].mxu0 %vm380_vm4, %v732_v17 }
 0x67d   :  { %v3155_v21 = vpop.eup %3154 }
 0x67e   :  { %v730_v22 = vmul.f32 %v3155_v21, %v3151_v11 }
 0x680   :  { %2859 = vmatmul.mubr.msk.f32.vlgmr.msra.gmra.mrb[8].mxu1 %vm380_vm4, %v730_v22 }
 0x681   :  { %3040 = vmatpush3.bf16.msra.mxu1 %v3037_v26  ;;  %v1127_v26 = vld [vmem:[#allocation5 + $0xf0] sm:$0xff] }
 0x682   :  { %3042 = vmatprep.subr.bf16.mxu1 %v3041_v28  ;;  %v3065_v24 = vpack.c.bf16 %v1127_v26, %v1126_v25 }
 0x685   :  { %3044 = vmatpush3.bf16.msra.mxu1 %v3041_v28 }
 0x686   :  { %3054 = vmatprep.subr.bf16.mxu1 %v3053_v63 }
 0x74f   :  { %v881_v29 = vpop.f32.mrb[8].mxu0 }
 0x750   :  { %v2865_v30 = vpop.f32.mrb[9].mxu0 }
 0x753   :  { %v805_v31 = vpop.f32.mrb[8].mxu1 }
 0x754   :  { %887 = vrot.lane.b32.xlu1 %v805_v31, %s3279_s10  ;;  %v2860_v32 = vpop.f32.mrb[9].mxu1 }
 0x758   :  { %889 = vrot.lane.b32.xlu1 %v881_v29, %s3279_s10 }
 0x7c6   :  { %v888_v33 = vpop.permute.xlu1 %887 }
 0x7c7   :  { %v893_v34 = vsel %vm228_vm3, %v475_v56, %v888_v33 }
 0x7c8   :  { %2874 = vmatprep.mubr.msk.f32.mxu1 %vm143_vm1, %v893_v34  ;;  %v2658_v34 = vld [vmem:[#allocation5 + $0xf8] ss:$0 sm:$0xff] }
 0x7ca   :  { %v890_v35 = vpop.permute.xlu1 %889 }
 0x7cb   :  { %v894_v36 = vsel %vm228_vm3, %v3392_v58, %v890_v35  ;;  %v1031_v58 = vld [vmem:[#allocation5 + $0xa8] sm:$0xff] }
 0x7cc   :  { %2875 = vmatmul.mubr.msk.f32.vlgmr.msra.gmra.mrb[10].mxu1 %vm143_vm1, %v894_v36  ;;  %v3049_v59 = vpack.c.bf16 %v1031_v58, %v1030_v57 }
 0x7cd   :  { %3056 = vmatpush3.bf16.msra.mxu1 %v3053_v63 }
 0x7ce   :  { %3058 = vmatprep.subr.bf16.mxu1 %v3057_v1 }
 0x7d1   :  { %3060 = vmatpush3.bf16.msra.mxu1 %v3057_v1 }
 0x7d2   :  { %3062 = vmatprep.subr.bf16.mxu1 %v3061_v4 }
 0x7d5   :  { %3064 = vmatpush3.bf16.msra.mxu1 %v3061_v4  ;;  %v2662_v4 = vld [vmem:[#allocation5 + $0x108] ss:$0 sm:$0xff] }
 0x7d6   :  { %3066 = vmatprep.subr.bf16.mxu1 %v3065_v24 }
 0x7d9   :  { %3068 = vmatpush3.bf16.msra.mxu1 %v3065_v24 }
 0x7da   :  { %2928 = vmatprep.subr.mxu1 %v3272_v20 }
 0x89f   :  { %v2876_v38 = vpop.f32.mrb[10].mxu1 }
 0x8a0   :  { %v982_v39 = vadd.f32 %v2876_v38, %v2650_v37  ;;  %v976_v40 = vpop.f32.mrb[11].mxu1 }
 0x8a1   :  { %v977_v41 = vadd.f32 %v2650_v37, %v976_v40 }
 0x8a2   :  { %v986_v42 = vadd.f32 %v982_v39, %v3326_v19 }
 0x8a3   :  { %v985_v43 = vadd.f32 %v977_v41, %v3324_v18  ;;  %v1028_v18 = vld [vmem:[#allocation5 + $0x90] sm:$0xff] }
 0x8a4   :  { %v992_v44 = vsel %vm143_vm1, %v986_v42, 0.0  ;;  %v3045_v56 = vpack.c.bf16 %v1029_v55, %v1028_v18  ;;  %v1259_v18 = vld [vmem:[#allocation5 + $0x120] sm:$0xff]  ;;  %v1260_v55 = vld [vmem:[#allocation5 + $0x128] sm:$0xff] }
 0x8a5   :  { %993 = vadd.xlane.f32.xlu1 %v992_v44  ;;  %v989_v45 = vsel %vm143_vm1, %v985_v43, 0.0 }
 0x8a6   :  { %990 = vadd.xlane.f32.xlu0 %v989_v45  ;;  %3046 = vmatprep.subr.bf16.mxu0 %v3045_v56 }
 0x8a7   :  { %3048 = vmatpush3.bf16.msra.mxu0 %v3045_v56  ;;  %v3073_v56 = vpack.c.bf16 %v1260_v55, %v1259_v18 }
 0x8a8   :  { %3050 = vmatprep.subr.bf16.mxu0 %v3049_v59 }
 0x8ab   :  { %3052 = vmatpush3.bf16.msra.mxu0 %v3049_v59 }
 0x932   :  { %v994_v46 = vpop.xlane.xlu1 %993 }
 0x933   :  { %v997_v47 = vmul.f32 0.03125, %v994_v46  ;;  %v991_v48 = vpop.xlane.xlu0 %990 }
 0x934   :  { %v996_v49 = vmul.f32 0.03125, %v991_v48 }
 0x935   :  { %v999_v50 = vsub.f32 %v986_v42, %v997_v47 }
 0x936   :  { %v998_v51 = vsub.f32 %v985_v43, %v996_v49 }
 0x937   :  { %v1001_v54 = vmul.f32 %v999_v50, %v999_v50 }
 0x938   :  { %v1000_v52 = vmul.f32 %v998_v51, %v998_v51 }
 0x939   :  { %v1005_v19 = vsel %vm143_vm1, %v1001_v54, 0.0  ;;  %v1258_v54 = vld [vmem:[#allocation5 + $0x118] sm:$0xff] }
 0x93a   :  { %v1002_v53 = vsel %vm143_vm1, %v1000_v52, 0.0 }
 0x93b   :  { %1003 = vadd.xlane.f32.xlu0 %v1002_v53  ;;  %v1257_v53 = vld [vmem:[#allocation5 + $0x110] sm:$0xff] }
 0x93f   :  { %1006 = vadd.xlane.f32.xlu0 %v1005_v19  ;;  %v3069_v19 = vpack.c.bf16 %v1258_v54, %v1257_v53 }
 0x941   :  { %3070 = vmatprep.subr.bf16.mxu0 %v3069_v19 }
 0x9c8   :  { %v1004_v5 = vpop.xlane.xlu0 %1003 }
 0x9c9   :  { %v1008_v6 = vmul.f32 0.03125, %v1004_v5 }
 0x9cb   :  { %v1010_v7 = vadd.f32 1e-05, %v1008_v6 }
 0x9cc   :  { %v1007_v8 = vpop.xlane.xlu0 %1006 }
 0x9cd   :  { %3156 = vrsqrt.f32 %v1010_v7  ;;  %v1009_v9 = vmul.f32 0.03125, %v1007_v8 }
 0x9cf   :  { %v1011_v10 = vadd.f32 1e-05, %v1009_v9  ;;  %v2663_v9 = vld [vmem:[#allocation5 + $0x130] ss:$0 sm:$0xff] }
 0x9d1   :  { %3158 = vrsqrt.f32 %v1011_v10 }
 0x9d7   :  { %v3157_v11 = vpop.eup %3156 }
 0x9d8   :  { %v1014_v13 = vmul.f32 %v3157_v11, %v998_v51 }
 0x9da   :  { %v1020_v15 = vmul.f32 %v2653_v12, %v1014_v13 }
 0x9db   :  { %v3159_v16 = vpop.eup %3158 }
 0x9dc   :  { %v1015_v17 = vmul.f32 %v3159_v16, %v999_v50  ;;  %v1026_v21 = vadd.f32 %v2654_v14, %v1020_v15 }
 0x9de   :  { %v1021_v22 = vmul.f32 %v2653_v12, %v1015_v17  ;;  %2885 = vmatprep.mubr.msk.f32.mxu0 %vm143_vm1, %v1026_v21 }
 0x9e0   :  { %v1027_v23 = vadd.f32 %v2654_v14, %v1021_v22 }
 0x9e2   :  { %2886 = vmatmul.mubr.msk.f32.vlgmr.msra.gmra.mrb[10].mxu0 %vm143_vm1, %v1027_v23 }
 0x9e3   :  { %3072 = vmatpush3.bf16.msra.mxu0 %v3069_v19 }
 0x9e4   :  { %3074 = vmatprep.subr.bf16.mxu0 %v3073_v56 }
 0x9e7   :  { %3076 = vmatpush3.bf16.msra.mxu0 %v3073_v56 }
 0x9e8   :  { %2918 = vmatprep.subr.mxu0 %v3272_v20 }
 0xab5   :  { %v2887_v28 = vpop.f32.mrb[10].mxu0 }
 0xab6   :  { %v1115_v29 = vadd.f32 %v2887_v28, %v2655_v27  ;;  %v1109_v30 = vpop.f32.mrb[11].mxu0 }
 0xab7   :  { %v1110_v31 = vadd.f32 %v2655_v27, %v1109_v30 }
 0xab8   :  { %v1119_v33 = vmax.f32 %v1115_v29, 0.0 }
 0xab9   :  { %v1118_v32 = vmax.f32 %v1110_v31, 0.0 }
 0xabb   :  { %2904 = vmatprep.mubr.msk.f32.mxu1 %vm1133_vm5, %v1118_v32 }
 0xabc   :  { %2905 = vmatmul.mubr.msk.f32.vlgmr.msra.gmra.mrb[12].mxu1 %vm1133_vm5, %v1119_v33 }
 0xabd   :  { %2930 = vmatprep.mubr.msk.f32.mxu1 %vm3273_vm2, %v3272_v20 }
 0xb8f   :  { %v2906_v35 = vpop.f32.mrb[12].mxu1 }
 0xb90   :  { %v1212_v36 = vadd.f32 %v2906_v35, %v2658_v34  ;;  %v1206_v37 = vpop.f32.mrb[13].mxu1 }
 0xb91   :  { %v1207_v38 = vadd.f32 %v2658_v34, %v1206_v37 }
 0xb92   :  { %v1216_v39 = vadd.f32 %v1212_v36, %v1027_v23 }
 0xb93   :  { %v1215_v40 = vadd.f32 %v1207_v38, %v1026_v21 }
 0xb94   :  { %v1222_v41 = vsel %vm143_vm1, %v1216_v39, 0.0 }
 0xb95   :  { %1223 = vadd.xlane.f32.xlu0 %v1222_v41  ;;  %v1219_v42 = vsel %vm143_vm1, %v1215_v40, 0.0 }
 0xb96   :  { %1220 = vadd.xlane.f32.xlu1 %v1219_v42 }
 0xc22   :  { %v1224_v43 = vpop.xlane.xlu0 %1223 }
 0xc23   :  { %v1226_v44 = vmul.f32 0.03125, %v1224_v43  ;;  %v1221_v45 = vpop.xlane.xlu1 %1220 }
 0xc24   :  { %v1225_v46 = vmul.f32 0.03125, %v1221_v45 }
 0xc25   :  { %v1228_v47 = vsub.f32 %v1216_v39, %v1226_v44 }
 0xc26   :  { %v1227_v48 = vsub.f32 %v1215_v40, %v1225_v46 }
 0xc27   :  { %v1230_v49 = vmul.f32 %v1228_v47, %v1228_v47 }
 0xc28   :  { %v1229_v50 = vmul.f32 %v1227_v48, %v1227_v48 }
 0xc29   :  { %v1234_v51 = vsel %vm143_vm1, %v1230_v49, 0.0 }
 0xc2a   :  { %1235 = vadd.xlane.f32.xlu0 %v1234_v51  ;;  %v1231_v52 = vsel %vm143_vm1, %v1229_v50, 0.0 }
 0xc2b   :  { %1232 = vadd.xlane.f32.xlu1 %v1231_v52 }
 0xcb7   :  { %v1236_v57 = vpop.xlane.xlu0 %1235 }
 0xcb8   :  { %v1238_v58 = vmul.f32 0.03125, %v1236_v57  ;;  %v1233_v59 = vpop.xlane.xlu1 %1232 }
 0xcb9   :  { %v1237_v60 = vmul.f32 0.03125, %v1233_v59 }
 0xcba   :  { %v1240_v61 = vadd.f32 1e-05, %v1238_v58 }
 0xcbb   :  { %v1239_v62 = vadd.f32 1e-05, %v1237_v60 }
 0xcbc   :  { %3160 = vrsqrt.f32 %v1240_v61 }
 0xcbd   :  { %3162 = vrsqrt.f32 %v1239_v62 }
 0xcc6   :  { %v3161_v63 = vpop.eup %3160 }
 0xcc7   :  { %v3163_v1 = vpop.eup %3162  ;;  %v1244_v2 = vmul.f32 %v3161_v63, %v1228_v47 }
 0xcc8   :  { %v1243_v3 = vmul.f32 %v3163_v1, %v1227_v48 }
 0xcc9   :  { %v1250_v5 = vmul.f32 %v2661_v0, %v1244_v2 }
 0xcca   :  { %v1249_v6 = vmul.f32 %v2661_v0, %v1243_v3 }
 0xccb   :  { %v3431_v8 = vadd.f32 %v2662_v4, %v1250_v5 }
 0xccc   :  { %v3429_v7 = vadd.f32 %v2662_v4, %v1249_v6 }
 0xcce   :  { %2915 = vmatprep.mubr.msk.f32.mxu0 %vm143_vm1, %v3429_v7 }
 0xccf   :  { %2916 = vmatmul.mubr.msk.f32.vlgmr.msra.gmra.mrb[12].mxu0 %vm143_vm1, %v3431_v8 }
 0xcd0   :  { %2920 = vmatprep.mubr.msk.f32.mxu0 %vm3273_vm2, %v3272_v20 }
 0xda2   :  { %v2917_v10 = vpop.f32.mrb[12].mxu0 }
 0xda3   :  { %v3439_v11 = vadd.f32 %v2917_v10, %v2663_v9  ;;  %v1338_v12 = vpop.f32.mrb[13].mxu0 }
 0xda4   :  { %v3441_v13 = vadd.f32 %v2663_v9, %v1338_v12  ;;  %v2015_v12 = vld [vmem:[#allocation5 + $0x138] sm:$0xff] }
 0xda5   :  { %1425 = vrot.lane.b32.xlu0 %v3439_v11, %s3274_s1 }
 0xda6   :  { %1348 = vrot.lane.b32.xlu1 %v3441_v13, %s3274_s1 }
 0xe17   :  { %v1426_v15 = vpop.permute.xlu0 %1425 }
 0xe18   :  { %v1349_v14 = vpop.permute.xlu1 %1348 }
 0xe19   :  { %2919 = vmatpush3.xpose.msk.msra.mxu0 %vm228_vm3, %v1349_v14 }
 0xe1a   :  { %2923 = vmatprep.subr.mxu0 %v3272_v20 }
 0xe1c   :  { %2921 = vmatmul.mubr.msk.f32.vlgmr.msra.gmra.mrb[14].mxu0 %vm228_vm3, %v3441_v13 }
 0xe1d   :  { %2924 = vmatpush3.xpose.msk.msra.mxu0 %vm228_vm3, %v1426_v15  ;;  %2925 = vmatprep.mubr.msk.f32.mxu0 %vm3273_vm2, %v3272_v20  ;;  %v2018_v15 = vld [vmem:[#allocation5 + $0x150] sm:$0xff] }
 0xe1e   :  { %2933 = vmatprep.subr.mxu0 %v3272_v20 }
 0xe20   :  { %2926 = vmatmul.mubr.msk.f32.vlgmr.msra.gmra.mrb[16].mxu0 %vm228_vm3, %v3439_v11 }
 0xe21   :  { %2935 = vmatprep.mubr.msk.f32.mxu0 %vm3273_vm2, %v3272_v20 }
 0xeef   :  { %v1420_v16 = vpop.f32.mrb[14].mxu0 }
 0xef0   :  { %v2922_v17 = vpop.f32.mrb[15].mxu0  ;;  %v1501_v21 = vsel %vm380_vm4, %v1420_v16, -inf }
 0xef1   :  { %1502 = vmax.xlane.f32.xlu1 %v1501_v21 }
 0xef3   :  { %v1497_v22 = vpop.f32.mrb[16].mxu0 }
 0xef4   :  { %v2927_v23 = vpop.f32.mrb[17].mxu0  ;;  %v1504_v25 = vsel %vm380_vm4, %v1497_v22, -inf }
 0xef5   :  { %1505 = vmax.xlane.f32.xlu0 %v1504_v25 }
 0xf02   :  { %1523 = vrot.lane.b32.xlu1 %v3441_v13, %s3275_s6 }
 0xf06   :  { %1677 = vrot.lane.b32.xlu1 %v3441_v13, %s3276_s7 }
 0xf0a   :  { %1755 = vrot.lane.b32.xlu1 %v3439_v11, %s3276_s7 }
 0xf0b   :  { %1599 = vrot.lane.b32.xlu0 %v3439_v11, %s3275_s6 }
 0xf7e   :  { %v1503_v26 = vpop.xlane.xlu1 %1502 }
 0xf7f   :  { %v1507_v24 = vsub.f32 %v1420_v16, %v1503_v26 }
 0xf81   :  { %v1509_v27 = vmul.f32 1.442695, %v1507_v24 }
 0xf82   :  { %v1524_v28 = vpop.permute.xlu1 %1523  ;;  %v1506_v29 = vpop.xlane.xlu0 %1505 }
 0xf83   :  { %3164 = vpow2.f32 %v1509_v27  ;;  %v1508_v30 = vsub.f32 %v1497_v22, %v1506_v29  ;;  %2929 = vmatpush3.msra.mxu1 %v1524_v28  ;;  %v2678_v28 = vld [vmem:[#allocation5 + $0x158] ss:$0 sm:$0xff] }
 0xf84   :  { %2938 = vmatprep.subr.mxu1 %v3272_v20 }
 0xf85   :  { %v1511_v31 = vmul.f32 1.442695, %v1508_v30 }
 0xf86   :  { %v1600_v32 = vpop.permute.xlu0 %1599  ;;  %v1678_v37 = vpop.permute.xlu1 %1677 }
 0xf87   :  { %3166 = vpow2.f32 %v1511_v31  ;;  %2934 = vmatpush3.msra.mxu0 %v1600_v32 }
 0xf88   :  { %2943 = vmatprep.subr.mxu0 %v3272_v20 }
 0xf8a   :  { %v1756_v38 = vpop.permute.xlu1 %1755 }
 0xf8d   :  { %v3165_v33 = vpop.eup %3164 }
 0xf8e   :  { %v1513_v34 = vsel %vm380_vm4, %v3165_v33, 0.0 }
 0xf8f   :  { %1514 = vadd.xlane.f32.xlu1 %v1513_v34 }
 0xf91   :  { %v3167_v35 = vpop.eup %3166 }
 0xf92   :  { %v1516_v36 = vsel %vm380_vm4, %v3167_v35, 0.0 }
 0xf93   :  { %1517 = vadd.xlane.f32.xlu0 %v1516_v36 }
 0xfa0   :  { %1753 = vrot.lane.b32.xlu1 %v3439_v11, %s3277_s8 }
 0xfa9   :  { %1675 = vrot.lane.b32.xlu0 %v3441_v13, %s3277_s8 }
0x101c   :  { %v1515_v39 = vpop.xlane.xlu1 %1514 }
0x101d   :  { %3168 = vrcp.f32 %v1515_v39 }
0x1020   :  { %v1518_v40 = vpop.xlane.xlu0 %1517  ;;  %v1754_v46 = vpop.permute.xlu1 %1753 }
0x1021   :  { %3170 = vrcp.f32 %v1518_v40 }
0x1024   :  { %v1676_v45 = vpop.permute.xlu0 %1675 }
0x1027   :  { %v3169_v41 = vpop.eup %3168 }
0x1028   :  { %v1520_v42 = vmul.f32 %v3169_v41, %v3165_v33 }
0x102a   :  { %2931 = vmatmul.mubr.msk.f32.vlgmr.msra.gmra.mrb[14].mxu1 %vm380_vm4, %v1520_v42 }
0x102b   :  { %v3171_v43 = vpop.eup %3170  ;;  %2939 = vmatpush3.xpose.msk.msra.mxu1 %vm228_vm3, %v1678_v37  ;;  %2940 = vmatprep.mubr.msk.f32.mxu1 %vm3273_vm2, %v3272_v20 }
0x102c   :  { %v1522_v44 = vmul.f32 %v3171_v43, %v3167_v35  ;;  %2948 = vmatprep.subr.mxu1 %v3272_v20 }
0x102e   :  { %2936 = vmatmul.mubr.msk.f32.vlgmr.msra.gmra.mrb[18].mxu0 %vm380_vm4, %v1522_v44  ;;  %2941 = vmatmul.mubr.msk.f32.vlgmr.msra.gmra.mrb[16].mxu1 %vm228_vm3, %v1676_v45 }
0x102f   :  { %2944 = vmatpush3.xpose.msk.msra.mxu0 %vm228_vm3, %v1756_v38  ;;  %2945 = vmatprep.mubr.msk.f32.mxu0 %vm3273_vm2, %v3272_v20 }
0x1030   :  { %2953 = vmatprep.subr.mxu0 %v3272_v20  ;;  %2950 = vmatprep.mubr.msk.f32.mxu1 %vm3273_vm2, %v3272_v20 }
0x1032   :  { %2946 = vmatmul.mubr.msk.f32.vlgmr.msra.gmra.mrb[20].mxu0 %vm228_vm3, %v1754_v46  ;;  %v2148_v46 = vld [vmem:[#allocation5 + $0x178] sm:$0xff] }
0x1033   :  { %2955 = vmatprep.mubr.msk.f32.mxu0 %vm3273_vm2, %v3272_v20 }
0x10fd   :  { %v1595_v47 = vpop.f32.mrb[14].mxu1 }
0x10fe   :  { %v2932_v48 = vpop.f32.mrb[15].mxu1 }
0x10ff   :  { %v2149_v48 = vld [vmem:[#allocation5 + $0x180] sm:$0xff] }
0x1101   :  { %v1671_v49 = vpop.f32.mrb[18].mxu0  ;;  %v1749_v50 = vpop.f32.mrb[16].mxu1 }
0x1102   :  { %v2937_v51 = vpop.f32.mrb[19].mxu0  ;;  %v2942_v52 = vpop.f32.mrb[17].mxu1  ;;  %v1831_v53 = vsel %vm380_vm4, %v1749_v50, -inf }
0x1103   :  { %1832 = vmax.xlane.f32.xlu0 %v1831_v53  ;;  %v2239_v51 = vld [vmem:[#allocation5 + $0x198] sm:$0xff]  ;;  %v2240_v52 = vld [vmem:[#allocation5 + $0x1a0] sm:$0xff]  ;;  %v2241_v53 = vld [vmem:[#allocation5 + $0x1a8] sm:$0xff] }
0x1105   :  { %v1827_v54 = vpop.f32.mrb[20].mxu0 }
0x1106   :  { %v2947_v19 = vpop.f32.mrb[21].mxu0  ;;  %v1834_v18 = vsel %vm380_vm4, %v1827_v54, -inf }
0x1107   :  { %1835 = vmax.xlane.f32.xlu1 %v1834_v18  ;;  %v2242_v19 = vld [vmem:[#allocation5 + $0x1b0] sm:$0xff] }
0x1108   :  { %v3097_v18 = vpack.c.bf16 %v2242_v19, %v2241_v53  ;;  %v2689_v19 = vld [vmem:[#allocation5 + $0x1e0] ss:$0 sm:$0xff] }
0x1118   :  { %1853 = vrot.lane.b32.xlu1 %v3441_v13, %s3278_s9  ;;  %v2016_v13 = vld [vmem:[#allocation5 + $0x140] sm:$0xff] }
0x1119   :  { %v3077_v14 = vpack.c.bf16 %v2016_v13, %v2015_v12  ;;  %v2245_v13 = vld [vmem:[#allocation5 + $0x1c8] sm:$0xff] }
0x1190   :  { %v1833_v55 = vpop.xlane.xlu0 %1832 }
0x1191   :  { %v1837_v56 = vsub.f32 %v1749_v50, %v1833_v55  ;;  %v2243_v55 = vld [vmem:[#allocation5 + $0x1b8] sm:$0xff] }
0x1193   :  { %v1839_v57 = vmul.f32 1.442695, %v1837_v56  ;;  %v2244_v56 = vld [vmem:[#allocation5 + $0x1c0] sm:$0xff] }
0x1194   :  { %v1836_v58 = vpop.xlane.xlu1 %1835 }
0x1195   :  { %3172 = vpow2.f32 %v1839_v57  ;;  %v1838_v59 = vsub.f32 %v1827_v54, %v1836_v58  ;;  %v3093_v54 = vpack.c.bf16 %v2240_v52, %v2239_v51  ;;  %v3101_v57 = vpack.c.bf16 %v2244_v56, %v2243_v55 }
0x1197   :  { %v1841_v60 = vmul.f32 1.442695, %v1838_v59 }
0x1198   :  { %v1854_v61 = vpop.permute.xlu1 %1853 }
0x1199   :  { %3174 = vpow2.f32 %v1841_v60  ;;  %2949 = vmatpush3.msra.mxu1 %v1854_v61 }
0x119a   :  { %3078 = vmatprep.subr.bf16.mxu1 %v3077_v14 }
0x119f   :  { %v3173_v62 = vpop.eup %3172 }
0x11a0   :  { %v1843_v63 = vsel %vm380_vm4, %v3173_v62, 0.0 }
0x11a1   :  { %1844 = vadd.xlane.f32.xlu0 %v1843_v63 }
0x11a3   :  { %v3175_v0 = vpop.eup %3174 }
0x11a4   :  { %v1846_v1 = vsel %vm380_vm4, %v3175_v0, 0.0 }
0x11a5   :  { %1847 = vadd.xlane.f32.xlu0 %v1846_v1  ;;  %v2681_v1 = vld [vmem:[#allocation5 + $0x160] ss:$0 sm:$0xff] }
0x11bb   :  { %1929 = vrot.lane.b32.xlu0 %v3439_v11, %s3278_s9  ;;  %v2017_v11 = vld [vmem:[#allocation5 + $0x148] sm:$0xff] }
0x11bc   :  { %v3081_v16 = vpack.c.bf16 %v2018_v15, %v2017_v11  ;;  %v2683_v15 = vld [vmem:[#allocation5 + $0x190] ss:$0 sm:$0xff] }
0x122e   :  { %v1845_v2 = vpop.xlane.xlu0 %1844 }
0x122f   :  { %3176 = vrcp.f32 %v1845_v2 }
0x1232   :  { %v1848_v3 = vpop.xlane.xlu0 %1847 }
0x1233   :  { %3178 = vrcp.f32 %v1848_v3  ;;  %v2682_v3 = vld [vmem:[#allocation5 + $0x168] ss:$0 sm:$0xff] }
0x1236   :  { %v1930_v4 = vpop.permute.xlu0 %1929 }
0x1237   :  { %2954 = vmatpush3.msra.mxu0 %v1930_v4 }
0x1239   :  { %v3177_v5 = vpop.eup %3176 }
0x123a   :  { %v1850_v6 = vmul.f32 %v3177_v5, %v3173_v62 }
0x123c   :  { %2951 = vmatmul.mubr.msk.f32.vlgmr.msra.gmra.mrb[18].mxu1 %vm380_vm4, %v1850_v6 }
0x123d   :  { %v3179_v9 = vpop.eup %3178  ;;  %3080 = vmatpush3.bf16.msra.mxu1 %v3077_v14  ;;  %v2246_v14 = vld [vmem:[#allocation5 + $0x1d0] sm:$0xff] }
0x123e   :  { %v1852_v10 = vmul.f32 %v3179_v9, %v3175_v0  ;;  %3082 = vmatprep.subr.bf16.mxu1 %v3081_v16  ;;  %v3105_v11 = vpack.c.bf16 %v2246_v14, %v2245_v13 }
0x1240   :  { %2956 = vmatmul.mubr.msk.f32.vlgmr.msra.gmra.mrb[22].mxu0 %vm380_vm4, %v1852_v10 }
0x1241   :  { %3084 = vmatpush3.bf16.msra.mxu1 %v3081_v16 }
0x1242   :  { %3094 = vmatprep.subr.bf16.mxu1 %v3093_v54 }
0x130f   :  { %v1925_v17 = vpop.f32.mrb[18].mxu1 }
0x1310   :  { %2007 = vrot.lane.b32.xlu1 %v1925_v17, %s3279_s10  ;;  %v2952_v21 = vpop.f32.mrb[19].mxu1 }
0x1313   :  { %v2001_v22 = vpop.f32.mrb[22].mxu0 }
0x1314   :  { %2009 = vrot.lane.b32.xlu1 %v2001_v22, %s3279_s10  ;;  %v2957_v23 = vpop.f32.mrb[23].mxu0 }
0x1382   :  { %v2008_v25 = vpop.permute.xlu1 %2007 }
0x1383   :  { %v2013_v26 = vsel %vm228_vm3, %v1595_v47, %v2008_v25 }
0x1384   :  { %2966 = vmatprep.mubr.msk.f32.mxu1 %vm143_vm1, %v2013_v26  ;;  %v2686_v26 = vld [vmem:[#allocation5 + $0x1d8] ss:$0 sm:$0xff] }
0x1386   :  { %v2010_v24 = vpop.permute.xlu1 %2009 }
0x1387   :  { %v2014_v27 = vsel %vm228_vm3, %v1671_v49, %v2010_v24  ;;  %v2150_v49 = vld [vmem:[#allocation5 + $0x188] sm:$0xff] }
0x1388   :  { %2967 = vmatmul.mubr.msk.f32.vlgmr.msra.gmra.mrb[20].mxu1 %vm143_vm1, %v2014_v27  ;;  %v3089_v50 = vpack.c.bf16 %v2150_v49, %v2149_v48 }
0x1389   :  { %3096 = vmatpush3.bf16.msra.mxu1 %v3093_v54 }
0x138a   :  { %3098 = vmatprep.subr.bf16.mxu1 %v3097_v18 }
0x138d   :  { %3100 = vmatpush3.bf16.msra.mxu1 %v3097_v18 }
0x138e   :  { %3102 = vmatprep.subr.bf16.mxu1 %v3101_v57 }
0x1391   :  { %3104 = vmatpush3.bf16.msra.mxu1 %v3101_v57  ;;  %v2690_v57 = vld [vmem:[#allocation5 + $0x1e8] ss:$0 sm:$0xff] }
0x1392   :  { %3106 = vmatprep.subr.bf16.mxu1 %v3105_v11 }
0x1395   :  { %3108 = vmatpush3.bf16.msra.mxu1 %v3105_v11 }
0x145b   :  { %v2968_v29 = vpop.f32.mrb[20].mxu1 }
0x145c   :  { %v2102_v30 = vadd.f32 %v2968_v29, %v2678_v28  ;;  %v2096_v31 = vpop.f32.mrb[21].mxu1 }
0x145d   :  { %v2097_v32 = vadd.f32 %v2678_v28, %v2096_v31 }
0x145e   :  { %v2106_v33 = vadd.f32 %v2102_v30, %v3431_v8 }
0x145f   :  { %v2105_v34 = vadd.f32 %v2097_v32, %v3429_v7  ;;  %v2147_v7 = vld [vmem:[#allocation5 + $0x170] sm:$0xff] }
0x1460   :  { %v2112_v35 = vsel %vm143_vm1, %v2106_v33, 0.0  ;;  %v3085_v47 = vpack.c.bf16 %v2148_v46, %v2147_v7  ;;  %v2377_v7 = vld [vmem:[#allocation5 + $0x200] sm:$0xff]  ;;  %v2378_v46 = vld [vmem:[#allocation5 + $0x208] sm:$0xff] }
0x1461   :  { %2113 = vadd.xlane.f32.xlu1 %v2112_v35  ;;  %v2109_v36 = vsel %vm143_vm1, %v2105_v34, 0.0 }
0x1462   :  { %2110 = vadd.xlane.f32.xlu0 %v2109_v36  ;;  %3086 = vmatprep.subr.bf16.mxu0 %v3085_v47 }
0x1463   :  { %3088 = vmatpush3.bf16.msra.mxu0 %v3085_v47  ;;  %v3113_v47 = vpack.c.bf16 %v2378_v46, %v2377_v7  ;;  %v2531_v7 = vld [vmem:[#allocation5 + $0x220] sm:$0xff] }
0x1464   :  { %3090 = vmatprep.subr.bf16.mxu0 %v3089_v50 }
0x1467   :  { %3092 = vmatpush3.bf16.msra.mxu0 %v3089_v50 }
0x14ee   :  { %v2114_v37 = vpop.xlane.xlu1 %2113 }
0x14ef   :  { %v2116_v38 = vmul.f32 0.03125, %v2114_v37  ;;  %v2111_v39 = vpop.xlane.xlu0 %2110 }
0x14f0   :  { %v2115_v40 = vmul.f32 0.03125, %v2111_v39 }
0x14f1   :  { %v2118_v41 = vsub.f32 %v2106_v33, %v2116_v38 }
0x14f2   :  { %v2117_v42 = vsub.f32 %v2105_v34, %v2115_v40 }
0x14f3   :  { %v2120_v45 = vmul.f32 %v2118_v41, %v2118_v41 }
0x14f4   :  { %v2119_v43 = vmul.f32 %v2117_v42, %v2117_v42 }
0x14f5   :  { %v2124_v8 = vsel %vm143_vm1, %v2120_v45, 0.0  ;;  %v2376_v45 = vld [vmem:[#allocation5 + $0x1f8] sm:$0xff] }
0x14f6   :  { %v2121_v44 = vsel %vm143_vm1, %v2119_v43, 0.0 }
0x14f7   :  { %2122 = vadd.xlane.f32.xlu0 %v2121_v44  ;;  %v2375_v44 = vld [vmem:[#allocation5 + $0x1f0] sm:$0xff] }
0x14fb   :  { %2125 = vadd.xlane.f32.xlu0 %v2124_v8  ;;  %v3109_v8 = vpack.c.bf16 %v2376_v45, %v2375_v44 }
0x14fd   :  { %3110 = vmatprep.subr.bf16.mxu0 %v3109_v8 }
0x1584   :  { %v2123_v58 = vpop.xlane.xlu0 %2122 }
0x1585   :  { %v2127_v59 = vmul.f32 0.03125, %v2123_v58 }
0x1587   :  { %v2129_v60 = vadd.f32 1e-05, %v2127_v59 }
0x1588   :  { %v2126_v61 = vpop.xlane.xlu0 %2125 }
0x1589   :  { %3180 = vrsqrt.f32 %v2129_v60  ;;  %v2128_v62 = vmul.f32 0.03125, %v2126_v61 }
0x158b   :  { %v2130_v63 = vadd.f32 1e-05, %v2128_v62  ;;  %v3280_v62 = vmov 0  }
0x158c   :  { %3139 = vset.pattern.permute.xlu0 %v3280_v62  ;;  %3138 = vset.pattern.permute.xlu1 %v3280_v62 }
0x158d   :  { %3182 = vrsqrt.f32 %v2130_v63  ;;  %v2691_v63 = vld [vmem:[#allocation5 + $0x210] ss:$0 sm:$0xff] }
0x1593   :  { %v3181_v0 = vpop.eup %3180 }
0x1594   :  { %v2133_v2 = vmul.f32 %v3181_v0, %v2117_v42 }
0x1596   :  { %v2139_v4 = vmul.f32 %v2681_v1, %v2133_v2 }
0x1597   :  { %v3183_v5 = vpop.eup %3182 }
0x1598   :  { %v2134_v6 = vmul.f32 %v3183_v5, %v2118_v41  ;;  %v2145_v9 = vadd.f32 %v2682_v3, %v2139_v4 }
0x159a   :  { %v2140_v10 = vmul.f32 %v2681_v1, %v2134_v6  ;;  %2977 = vmatprep.mubr.msk.f32.mxu0 %vm143_vm1, %v2145_v9 }
0x159c   :  { %v2146_v12 = vadd.f32 %v2682_v3, %v2140_v10 }
0x159e   :  { %2978 = vmatmul.mubr.msk.f32.vlgmr.msra.gmra.mrb[24].mxu0 %vm143_vm1, %v2146_v12 }
0x159f   :  { %3112 = vmatpush3.bf16.msra.mxu0 %v3109_v8  ;;  %v2530_v8 = vld [vmem:[#allocation5 + $0x218] sm:$0xff] }
0x15a0   :  { %3114 = vmatprep.subr.bf16.mxu0 %v3113_v47  ;;  %v3118_v46 = vpack.c.bf16 %v2531_v7, %v2530_v8 }
0x15a3   :  { %3116 = vmatpush3.bf16.msra.mxu0 %v3113_v47  ;;  %v3281_v47 = vmov 0.0|0.0  }
0x15a4   :  { %3117 = vmatprep.subr.bf16.mxu0 %v3281_v47 }
0x1671   :  { %v2979_v16 = vpop.f32.mrb[24].mxu0 }
0x1672   :  { %v2234_v17 = vadd.f32 %v2979_v16, %v2683_v15  ;;  %v2228_v21 = vpop.f32.mrb[25].mxu0 }
0x1673   :  { %v2229_v22 = vadd.f32 %v2683_v15, %v2228_v21 }
0x1674   :  { %v2238_v25 = vmax.f32 %v2234_v17, 0.0 }
0x1675   :  { %v2237_v23 = vmax.f32 %v2229_v22, 0.0 }
0x1677   :  { %2996 = vmatprep.mubr.msk.f32.mxu1 %vm1133_vm5, %v2237_v23 }
0x1678   :  { %2997 = vmatmul.mubr.msk.f32.vlgmr.msra.gmra.mrb[22].mxu1 %vm1133_vm5, %v2238_v25 }
0x174b   :  { %v2998_v24 = vpop.f32.mrb[22].mxu1 }
0x174c   :  { %v2330_v27 = vadd.f32 %v2998_v24, %v2686_v26  ;;  %v2324_v28 = vpop.f32.mrb[23].mxu1 }
0x174d   :  { %v2325_v29 = vadd.f32 %v2686_v26, %v2324_v28 }
0x174e   :  { %v2334_v30 = vadd.f32 %v2330_v27, %v2146_v12 }
0x174f   :  { %v2333_v31 = vadd.f32 %v2325_v29, %v2145_v9 }
0x1750   :  { %v2340_v32 = vsel %vm143_vm1, %v2334_v30, 0.0 }
0x1751   :  { %2341 = vadd.xlane.f32.xlu0 %v2340_v32  ;;  %v2337_v33 = vsel %vm143_vm1, %v2333_v31, 0.0 }
0x1752   :  { %2338 = vadd.xlane.f32.xlu1 %v2337_v33 }
0x17de   :  { %v2342_v34 = vpop.xlane.xlu0 %2341 }
0x17df   :  { %v2344_v35 = vmul.f32 0.03125, %v2342_v34  ;;  %v2339_v36 = vpop.xlane.xlu1 %2338 }
0x17e0   :  { %v2343_v37 = vmul.f32 0.03125, %v2339_v36 }
0x17e1   :  { %v2346_v38 = vsub.f32 %v2334_v30, %v2344_v35 }
0x17e2   :  { %v2345_v39 = vsub.f32 %v2333_v31, %v2343_v37 }
0x17e3   :  { %v2348_v40 = vmul.f32 %v2346_v38, %v2346_v38 }
0x17e4   :  { %v2347_v41 = vmul.f32 %v2345_v39, %v2345_v39 }
0x17e5   :  { %v2352_v42 = vsel %vm143_vm1, %v2348_v40, 0.0 }
0x17e6   :  { %2353 = vadd.xlane.f32.xlu0 %v2352_v42  ;;  %v2349_v43 = vsel %vm143_vm1, %v2347_v41, 0.0 }
0x17e7   :  { %2350 = vadd.xlane.f32.xlu1 %v2349_v43 }
0x1873   :  { %v2354_v48 = vpop.xlane.xlu0 %2353 }
0x1874   :  { %v2356_v49 = vmul.f32 0.03125, %v2354_v48  ;;  %v2351_v50 = vpop.xlane.xlu1 %2350  ;;  %v2532_v48 = vld [vmem:[#allocation5 + $0x228] sm:$0xff] }
0x1875   :  { %v2355_v51 = vmul.f32 0.03125, %v2351_v50 }
0x1876   :  { %v2358_v52 = vadd.f32 1e-05, %v2356_v49  ;;  %v2533_v49 = vld [vmem:[#allocation5 + $0x230] sm:$0xff] }
0x1877   :  { %v2357_v53 = vadd.f32 1e-05, %v2355_v51  ;;  %v3121_v50 = vpack.c.bf16 %v2533_v49, %v2532_v48 }
0x1878   :  { %3184 = vrsqrt.f32 %v2358_v52 }
0x1879   :  { %3186 = vrsqrt.f32 %v2357_v53 }
0x1882   :  { %v3185_v54 = vpop.eup %3184 }
0x1883   :  { %v3187_v18 = vpop.eup %3186  ;;  %v2362_v55 = vmul.f32 %v3185_v54, %v2346_v38 }
0x1884   :  { %v2361_v56 = vmul.f32 %v3187_v18, %v2345_v39 }
0x1885   :  { %v2368_v58 = vmul.f32 %v2689_v19, %v2362_v55 }
0x1886   :  { %v2367_v59 = vmul.f32 %v2689_v19, %v2361_v56 }
0x1887   :  { %v3525_v61 = vadd.f32 %v2690_v57, %v2368_v58 }
0x1888   :  { %v3523_v60 = vadd.f32 %v2690_v57, %v2367_v59 }
0x188a   :  { %3007 = vmatprep.mubr.msk.f32.mxu0 %vm143_vm1, %v3523_v60 }
0x188b   :  { %3008 = vmatmul.mubr.msk.f32.vlgmr.msra.gmra.mrb[26].mxu0 %vm143_vm1, %v3525_v61 }
0x188c   :  { %3018 = vmatprep.mubr.msk.f32.mxu0 %vm3273_vm2, %v3272_v20  ;;  %3119 = vmatpush3.bf16.msra.mxu0 %v3118_v46 }
0x188d   :  { %3120 = vmatprep.subr.bf16.mxu0 %v3281_v47 }
0x1890   :  { %3122 = vmatpush3.bf16.msra.mxu0 %v3121_v50 }
0x195e   :  { %v3009_v0 = vpop.f32.mrb[26].mxu0 }
0x195f   :  { %v2462_v1 = vadd.f32 %v3009_v0, %v2691_v63  ;;  %v2456_v2 = vpop.f32.mrb[27].mxu0 }
0x1960   :  { %v2457_v3 = vadd.f32 %v2691_v63, %v2456_v2 }
0x1961   :  { %v2473_v4 = vsel %vm2465_vm6, %v2462_v1, -inf }
0x1962   :  { %v2474_v5 = vrot.slane %v2473_v4, 4  ;;  %v2466_v6 = vsel %vm2465_vm6, %v2457_v3, -inf }
0x1963   :  { %v2467_v9 = vrot.slane %v2466_v6, 4 }
0x1964   :  { %v2475_v10 = vmax.f32 %v2473_v4, %v2474_v5 }
0x1965   :  { %v2468_v12 = vmax.f32 %v2466_v6, %v2467_v9 }
0x1966   :  { %v2476_v13 = vrot.slane %v2475_v10, 2 }
0x1967   :  { %v2469_v14 = vrot.slane %v2468_v12, 2 }
0x1968   :  { %v2477_v20 = vmax.f32 %v2475_v10, %v2476_v13 }
0x1969   :  { %v2470_v11 = vmax.f32 %v2468_v12, %v2469_v14 }
0x196a   :  { %v2478_v15 = vrot.slane %v2477_v20, 1 }
0x196b   :  { %v2471_v16 = vrot.slane %v2470_v11, 1 }
0x196c   :  { %v2479_v17 = vmax.f32 %v2477_v20, %v2478_v15 }
0x196d   :  { %v2472_v21 = vmax.f32 %v2470_v11, %v2471_v16 }
0x196e   :  { %v2481_v22 = vsub.f32 %v2462_v1, %v2479_v17 }
0x196f   :  { %v2480_v23 = vsub.f32 %v2457_v3, %v2472_v21 }
0x1970   :  { %v2484_v25 = vmul.f32 1.442695, %v2481_v22 }
0x1971   :  { %v2482_v26 = vmul.f32 1.442695, %v2480_v23 }
0x1972   :  { %3188 = vpow2.f32 %v2484_v25 }
0x1973   :  { %3190 = vpow2.f32 %v2482_v26 }
0x197c   :  { %v3189_v24 = vpop.eup %3188 }
0x197d   :  { %v3191_v27 = vpop.eup %3190  ;;  %v2493_v28 = vsel %vm2465_vm6, %v3189_v24, 0.0 }
0x197e   :  { %v2494_v29 = vrot.slane %v2493_v28, 4  ;;  %v2486_v30 = vsel %vm2465_vm6, %v3191_v27, 0.0 }
0x197f   :  { %v2487_v31 = vrot.slane %v2486_v30, 4 }
0x1980   :  { %v2495_v32 = vadd.f32 %v2494_v29, %v2493_v28 }
0x1981   :  { %v2488_v33 = vadd.f32 %v2487_v31, %v2486_v30 }
0x1982   :  { %v2496_v34 = vrot.slane %v2495_v32, 2 }
0x1983   :  { %v2489_v35 = vrot.slane %v2488_v33, 2 }
0x1984   :  { %v2497_v36 = vadd.f32 %v2496_v34, %v2495_v32 }
0x1985   :  { %v2490_v37 = vadd.f32 %v2489_v35, %v2488_v33 }
0x1986   :  { %v2498_v38 = vrot.slane %v2497_v36, 1 }
0x1987   :  { %v2491_v39 = vrot.slane %v2490_v37, 1 }
0x1988   :  { %v2499_v40 = vadd.f32 %v2498_v38, %v2497_v36 }
0x1989   :  { %v2492_v41 = vadd.f32 %v2491_v39, %v2490_v37 }
0x198a   :  { %3192 = vrcp.f32 %v2499_v40 }
0x198b   :  { %3194 = vrcp.f32 %v2492_v41 }
0x1994   :  { %v3193_v42 = vpop.eup %3192 }
0x1995   :  { %v3195_v43 = vpop.eup %3194  ;;  %v2503_v44 = vmul.f32 %v3193_v42, %v3189_v24 }
0x1996   :  { %v2501_v45 = vmul.f32 %v3195_v43, %v3191_v27 }
0x1997   :  { %2511 = vperm.xlu0 %3139, %v2503_v44  }
0x1998   :  { %2506 = vperm.xlu1 %3138, %v2501_v45  }
0x1a16   :  { %v2512_v51 = vpop.permute.xlu0 %2511 }
0x1a17   :  { %v2515_v52 = vmul.f32 %v2512_v51, %v3525_v61  ;;  %v2507_v53 = vpop.permute.xlu1 %2506 }
0x1a18   :  { %v2514_v54 = vmul.f32 %v2507_v53, %v3523_v60  ;;  %v2694_v60 = vld [vmem:[#allocation5 + $0x238] ss:$0 sm:$0xff] }
0x1a19   :  { %v2523_v19 = vsel %vm143_vm1, %v2515_v52, 0.0 }
0x1a1a   :  { %v2524_v18 = vrot.slane %v2523_v19, 4  ;;  %v2516_v55 = vsel %vm143_vm1, %v2514_v54, 0.0 }
0x1a1b   :  { %v2517_v56 = vrot.slane %v2516_v55, 4 }
0x1a1c   :  { %v2525_v57 = vadd.f32 %v2524_v18, %v2523_v19 }
0x1a1d   :  { %v2518_v58 = vadd.f32 %v2517_v56, %v2516_v55 }
0x1a1e   :  { %v2526_v59 = vrot.slane %v2525_v57, 2 }
0x1a1f   :  { %v2519_v62 = vrot.slane %v2518_v58, 2 }
0x1a20   :  { %v2527_v63 = vadd.f32 %v2526_v59, %v2525_v57 }
0x1a21   :  { %v2520_v0 = vadd.f32 %v2519_v62, %v2518_v58 }
0x1a22   :  { %v2528_v1 = vrot.slane %v2527_v63, 1 }
0x1a23   :  { %v2521_v2 = vrot.slane %v2520_v0, 1 }
0x1a24   :  { %v2529_v3 = vadd.f32 %v2528_v1, %v2527_v63 }
0x1a25   :  { %v2522_v61 = vadd.f32 %v2521_v2, %v2520_v0 }
0x1a27   :  { %v2542_v4 = vsel %vm2541_vm7, %v2529_v3, %v2522_v61 }
0x1a28   :  { %3019 = vmatmul.mubr.msk.f32.vlgmr.msra.gmra.mrb[28].mxu0 %vm143_vm1, %v2542_v4 }
0x1afb   :  { %v2611_v5 = vpop.f32.mrb[28].mxu0 }
0x1afc   :  { %v2612_v6 = vadd.f32 %v2694_v60, %v2611_v5  ;;  %v3020_v9 = vpop.f32.mrb[29].mxu0 }
0x1afe   :  { %2615 = vst [vmem:[#allocation7] sm:$0x3] %v2612_v6 }
0x1aff   :  { %3251 = shalt.err (!%p3248_p6)
}
0x1b00   :  { %s3252_s16 = scalar_lea.hbm %s3556_s2, 32 }
0x1b01   :  { %p3253_p7 = scmp.ne.s32.totalorder %s3556_s2, %s3252_s16  ;;  %p3256_p8 = scmp.lt.u32.totalorder %s3252_s16, %s3556_s2 }
0x1b03   :  { %p3258_p9 = pnand %p3256_p8, %p3253_p7 }
0x1b05   :  { %3261 = shalt.err (!%p3258_p9)
}
0x1b06   :  { %2625 = dma.vmem_to_hbm [thread:$0]  %s2623_s12, 32, %s3556_s2, [#allocation4]  }
0x1b07   :  { %3266 = dma.done.wait [#allocation4], 32  }
0x1b08   :  { %3267 = vsyncadd [#allocation4], 4294967264 }
0x1b09   :  { %2629 = vsyncpa [#allocation3], 1 }
0x1b0a   :  { %2630 = vsyncpa [#allocation6], 1 }
0x1b0b   :  { %2631 = vsyncpa [#allocation4], 1 }

</bundles_post_ra>
